<compile_context>
chip_gen: v7x
topology: tpu7x:2x2x1
jax: 0.10.0
libtpu: 0.0.40
codegen_flags: <defaults>
</compile_context>

<pallas_src>
import jax
import jax.numpy as jnp
from jax.experimental import pallas as pl
from jax.experimental.pallas import tpu as pltpu

_PR, _PC = 8, 128  # per-tile partial block: one vreg (sublane x lane)


# --------------------------------------------------------------------------
# Kernels
# --------------------------------------------------------------------------
def gather_mean_kernel(idx_ref, emb_hbm, mean_ref, gather_buf, dma_sems):
    # idx_ref : (context,) int32, SMEM (scalar prefetch)
    # emb_hbm : (vocab, dims) f32, HBM (no auto-DMA)
    # mean_ref: (1, dims) bf16 output (mean context embedding)
    context = gather_buf.shape[0]
    vocab = emb_hbm.shape[0]
    copies = []
    for i in range(context):                       # static unroll: all DMAs in flight
        idx = jnp.clip(idx_ref[i], 0, vocab - 1)   # guard OOB indices
        cp = pltpu.make_async_copy(
            emb_hbm.at[pl.ds(idx, 1), :],
            gather_buf.at[pl.ds(i, 1), :],
            dma_sems.at[i])
        cp.start()
        copies.append(cp)
    for cp in copies:
        cp.wait()
    mean = jnp.sum(gather_buf[...], axis=0, keepdims=True) * (1.0 / context)
    mean_ref[...] = mean.astype(mean_ref.dtype)


def logits_partials_kernel(mean_ref, w_ref, b_ref,
                           logits_ref, tmax_ref, tsum_ref):
    # mean_ref : (1, dims) bf16   w_ref: (dims, tn) bf16 (pre-transposed weight)
    # b_ref / logits_ref : (1, tn) f32
    # tmax_ref / tsum_ref: (8, 128) f32 -- per-tile scalar broadcast into one vreg
    logits = jnp.dot(mean_ref[...], w_ref[...],
                     preferred_element_type=jnp.float32) + b_ref[...]
    logits_ref[...] = logits
    m = jnp.max(logits)                        # per-tile max
    s = jnp.sum(jnp.exp(logits - m))           # per-tile sum-exp (pad lanes -> 0)
    tmax_ref[...] = jnp.broadcast_to(m, tmax_ref.shape)
    tsum_ref[...] = jnp.broadcast_to(s, tsum_ref.shape)


def normalize_kernel(logits_ref, tmax_ref, tsum_ref, out_ref):
    # Combine per-tile partials into the global log-sum-exp, then normalize.
    tmax = tmax_ref[...]
    tsum = tsum_ref[...]
    gmax = jnp.max(tmax)
    # Each per-tile scalar is replicated over an (8,128) block -> divide out.
    total = jnp.sum(tsum * jnp.exp(tmax - gmax)) * (1.0 / (_PR * _PC))
    lse = gmax + jnp.log(total)
    out_ref[...] = logits_ref[...] - lse


# --------------------------------------------------------------------------
# Wrapper
# --------------------------------------------------------------------------
def _pick_tile(vocab, dims, target_bytes=512 * 1024):
    """Lane-dense vocab tile (multiple of 128) targeting ~512 KiB bf16 per tile."""
    tn = max(128, ((target_bytes // (dims * 2)) // 128) * 128)
    vocab_128 = pl.cdiv(vocab, 128) * 128
    return min(tn, vocab_128)


def prepare_cbow_params(emb_table, lin_w, lin_b):
    """One-time parameter prep (model init, NOT per forward call): cast the
    linear weight to bf16, transpose to (dims, vocab) and pad the vocab axis
    to a multiple of the tile width (zeros in W, -1e30 in the bias)."""
    vocab, dims = emb_table.shape
    tn = _pick_tile(vocab, dims)
    pad_vocab = pl.cdiv(vocab, tn) * tn
    pad = pad_vocab - vocab
    w_t = jnp.pad(lin_w.astype(jnp.bfloat16).T, ((0, 0), (0, pad)))
    b_pad = jnp.pad(lin_b.astype(jnp.float32), (0, pad),
                    constant_values=-1e30).reshape(1, pad_vocab)
    return {"emb": emb_table.astype(jnp.float32), "w_t": w_t, "b_pad": b_pad}


def cbow_forward(indices, params):
    """indices: (context,) int32; params from prepare_cbow_params().
    Returns (1, vocab) f32 log-probabilities."""
    emb, w_t, b_pad = params["emb"], params["w_t"], params["b_pad"]
    vocab, dims = emb.shape
    pad_vocab = w_t.shape[1]
    tn = _pick_tile(vocab, dims)
    assert pad_vocab % tn == 0
    nt = pad_vocab // tn
    context = indices.shape[0]

    # 1) Gather the context embedding rows from HBM and average them.
    mean_bf = pl.pallas_call(
        gather_mean_kernel,
        out_shape=jax.ShapeDtypeStruct((1, dims), jnp.bfloat16),
        grid_spec=pltpu.PrefetchScalarGridSpec(
            num_scalar_prefetch=1,
            grid=(1,),
            in_specs=[pl.BlockSpec(memory_space=pl.ANY)],         # emb table in HBM
            out_specs=pl.BlockSpec((1, dims), lambda i, idx: (0, 0)),
            scratch_shapes=[pltpu.VMEM((context, dims), jnp.float32),
                            pltpu.SemaphoreType.DMA((context,))]),
    )(indices.astype(jnp.int32), emb)

    # 2) Tiled matvec over the vocab + per-tile softmax partials (parallel axis).
    logits, tmax, tsum = pl.pallas_call(
        logits_partials_kernel,
        out_shape=(jax.ShapeDtypeStruct((1, pad_vocab), jnp.float32),
                   jax.ShapeDtypeStruct((nt * _PR, _PC), jnp.float32),
                   jax.ShapeDtypeStruct((nt * _PR, _PC), jnp.float32)),
        grid=(nt,),
        in_specs=[pl.BlockSpec((1, dims), lambda j: (0, 0)),
                  pl.BlockSpec((dims, tn), lambda j: (0, j)),
                  pl.BlockSpec((1, tn), lambda j: (0, j))],
        out_specs=[pl.BlockSpec((1, tn), lambda j: (0, j)),
                   pl.BlockSpec((_PR, _PC), lambda j: (j, 0)),
                   pl.BlockSpec((_PR, _PC), lambda j: (j, 0))],
        compiler_params=pltpu.CompilerParams(
            dimension_semantics=("parallel",)),
    )(mean_bf, w_t, b_pad)

    # 3) Single-step combine of the partials + log-softmax normalization.
    out_pad = pl.pallas_call(
        normalize_kernel,
        out_shape=jax.ShapeDtypeStruct((1, pad_vocab), jnp.float32),
        grid=(1,),
        in_specs=[pl.BlockSpec((1, pad_vocab), lambda i: (0, 0)),
                  pl.BlockSpec((nt * _PR, _PC), lambda i: (0, 0)),
                  pl.BlockSpec((nt * _PR, _PC), lambda i: (0, 0))],
        out_specs=pl.BlockSpec((1, pad_vocab), lambda i: (0, 0)),
    )(logits, tmax, tsum)

    return out_pad[:, :vocab]


# --------------------------------------------------------------------------
# Demo / self-check
# --------------------------------------------------------------------------
if __name__ == "__main__":
    vocab = 5000     # deliberately NOT a multiple of 128 -> exercises padding
    dims = 128
    context = 8      # number of context words fed to forward()

    key = jax.random.PRNGKey(0)
    k_emb, k_w, k_b, k_idx = jax.random.split(key, 4)

    # nn.Embedding default init: N(0, 1)
    emb_table = jax.random.normal(k_emb, (vocab, dims), dtype=jnp.float32)
    # nn.Linear default init: U(-1/sqrt(dims), 1/sqrt(dims))
    bound = 1.0 / (dims ** 0.5)
    lin_w = jax.random.uniform(k_w, (vocab, dims), jnp.float32, -bound, bound)
    lin_b = jax.random.uniform(k_b, (vocab,), jnp.float32, -bound, bound)
    indices = jax.random.randint(k_idx, (context,), 0, vocab, dtype=jnp.int32)

    params = prepare_cbow_params(emb_table, lin_w, lin_b)   # once, at "init"
    fwd = jax.jit(cbow_forward)
    out = jax.block_until_ready(fwd(indices, params))
    assert out.shape == (1, vocab)

    # Reference 1: emulate the kernel's precision (bf16 mean x bf16 weight, f32 acc).
    mean_f32 = jnp.mean(emb_table[indices], axis=0, keepdims=True)
    ref_logits_bf = jnp.dot(mean_f32.astype(jnp.bfloat16),
                            lin_w.astype(jnp.bfloat16).T,
                            preferred_element_type=jnp.float32) + lin_b[None, :]
    ref_bf = jax.nn.log_softmax(ref_logits_bf, axis=1)
    assert jnp.allclose(out, ref_bf, atol=2e-3, rtol=2e-3), "mismatch vs bf16 reference"

    # Reference 2: full-f32 torch-equivalent semantics (loose tolerance).
    ref_f32 = jax.nn.log_softmax(mean_f32 @ lin_w.T + lin_b[None, :], axis=1)
    assert jnp.allclose(out, ref_f32, atol=5e-2, rtol=5e-2), "mismatch vs f32 reference"

    print("KERNEL_OK")
</pallas_src>

<mosaic_0001>
module attributes {stable_mosaic.version = 11 : i64} {
  func.func @normalize_kernel(%arg0: i32, %arg1: memref<1x6144xf32, #tpu.memory_space<vmem>>, %arg2: memref<24x128xf32, #tpu.memory_space<vmem>>, %arg3: memref<24x128xf32, #tpu.memory_space<vmem>>, %arg4: memref<1x6144xf32, #tpu.memory_space<vmem>>) attributes {dimension_semantics = [#tpu.dimension_semantics<arbitrary>], iteration_bounds = array<i64: 1>, scalar_prefetch = 0 : i64, scratch_operands = 0 : i64, tpu.core_type = #tpu.core_type<tc>, window_params = [{pipeline_mode = #tpu.pipeline_mode<synchronous>, transform_indices = @transform_0, window_bounds = array<i64: 1, 6144>}, {pipeline_mode = #tpu.pipeline_mode<synchronous>, transform_indices = @transform_1, window_bounds = array<i64: 24, 128>}, {pipeline_mode = #tpu.pipeline_mode<synchronous>, transform_indices = @transform_2, window_bounds = array<i64: 24, 128>}, {pipeline_mode = #tpu.pipeline_mode<synchronous>, transform_indices = @transform_3, window_bounds = array<i64: 1, 6144>}]} {
    %c0 = arith.constant 0 : index
    %c0_0 = arith.constant 0 : index
    %0 = vector.load %arg2[%c0, %c0_0] : memref<24x128xf32, #tpu.memory_space<vmem>>, vector<24x128xf32>
    %c0_1 = arith.constant 0 : index
    %c0_2 = arith.constant 0 : index
    %1 = vector.load %arg3[%c0_1, %c0_2] : memref<24x128xf32, #tpu.memory_space<vmem>>, vector<24x128xf32>
    %2 = vector.shape_cast %0 : vector<24x128xf32> to vector<1x24x128xf32>
    %cst = arith.constant dense<0xFF800000> : vector<1xf32>
    %3 = vector.multi_reduction <maximumf>, %2, %cst [1, 2] : vector<1x24x128xf32> to vector<1xf32>
    %4 = vector.shape_cast %3 : vector<1xf32> to vector<1x1x1xf32>
    %5 = vector.extract %4[0, 0, 0] : f32 from vector<1x1x1xf32>
    %6 = vector.broadcast %5 : f32 to vector<24x128xf32>
    %7 = arith.subf %0, %6 : vector<24x128xf32>
    %8 = math.exp %7 : vector<24x128xf32>
    %9 = arith.mulf %1, %8 : vector<24x128xf32>
    %10 = vector.shape_cast %9 : vector<24x128xf32> to vector<1x24x128xf32>
    %cst_3 = arith.constant dense<0.000000e+00> : vector<1xf32>
    %11 = vector.multi_reduction <add>, %10, %cst_3 [1, 2] : vector<1x24x128xf32> to vector<1xf32>
    %12 = vector.shape_cast %11 : vector<1xf32> to vector<1x1x1xf32>
    %13 = vector.extract %12[0, 0, 0] : f32 from vector<1x1x1xf32>
    %cst_4 = arith.constant 9.765625E-4 : f32
    %14 = arith.mulf %13, %cst_4 : f32
    %15 = math.log %14 : f32
    %16 = arith.addf %5, %15 : f32
    %c0_5 = arith.constant 0 : index
    %c0_6 = arith.constant 0 : index
    %17 = vector.load %arg1[%c0_5, %c0_6] : memref<1x6144xf32, #tpu.memory_space<vmem>>, vector<1x6144xf32>
    %18 = vector.broadcast %16 : f32 to vector<1x6144xf32>
    %19 = arith.subf %17, %18 : vector<1x6144xf32>
    %c0_7 = arith.constant 0 : index
    %c0_8 = arith.constant 0 : index
    %20 = vector.load %arg4[%c0_7, %c0_8] : memref<1x6144xf32, #tpu.memory_space<vmem>>, vector<1x6144xf32>
    tpu.vector_store %arg4[%c0_7, %c0_8], %19 {strides = array<i32>} : memref<1x6144xf32, #tpu.memory_space<vmem>>, vector<1x6144xf32>,
    return
  }
  func.func @transform_0(%arg0: i32) -> (i32, i32) {
    %c0_i32 = arith.constant 0 : i32
    %c0_i32_0 = arith.constant 0 : i32
    %c0_i32_1 = arith.constant 0 : i32
    return %c0_i32, %c0_i32_0 : i32, i32
  }
  func.func @transform_1(%arg0: i32) -> (i32, i32) {
    %c0_i32 = arith.constant 0 : i32
    %c0_i32_0 = arith.constant 0 : i32
    %c0_i32_1 = arith.constant 0 : i32
    return %c0_i32, %c0_i32_0 : i32, i32
  }
  func.func @transform_2(%arg0: i32) -> (i32, i32) {
    %c0_i32 = arith.constant 0 : i32
    %c0_i32_0 = arith.constant 0 : i32
    %c0_i32_1 = arith.constant 0 : i32
    return %c0_i32, %c0_i32_0 : i32, i32
  }
  func.func @transform_3(%arg0: i32) -> (i32, i32) {
    %c0_i32 = arith.constant 0 : i32
    %c0_i32_0 = arith.constant 0 : i32
    %c0_i32_1 = arith.constant 0 : i32
    return %c0_i32, %c0_i32_0 : i32, i32
  }
}

module attributes {stable_mosaic.version = 11 : i64} {
  func.func @logits_partials_kernel(%arg0: i32, %arg1: memref<1x128xbf16, #tpu.memory_space<vmem>>, %arg2: memref<128x2048xbf16, #tpu.memory_space<vmem>>, %arg3: memref<1x2048xf32, #tpu.memory_space<vmem>>, %arg4: memref<1x2048xf32, #tpu.memory_space<vmem>>, %arg5: memref<8x128xf32, #tpu.memory_space<vmem>>, %arg6: memref<8x128xf32, #tpu.memory_space<vmem>>) attributes {dimension_semantics = [#tpu.dimension_semantics<parallel>], iteration_bounds = array<i64: 3>, scalar_prefetch = 0 : i64, scratch_operands = 0 : i64, tpu.core_type = #tpu.core_type<tc>, window_params = [{pipeline_mode = #tpu.pipeline_mode<synchronous>, transform_indices = @transform_0, window_bounds = array<i64: 1, 128>}, {transform_indices = @transform_1, window_bounds = array<i64: 128, 2048>}, {transform_indices = @transform_2, window_bounds = array<i64: 1, 2048>}, {transform_indices = @transform_3, window_bounds = array<i64: 1, 2048>}, {transform_indices = @transform_4, window_bounds = array<i64: 8, 128>}, {transform_indices = @transform_5, window_bounds = array<i64: 8, 128>}]} {
    %c0 = arith.constant 0 : index
    %c0_0 = arith.constant 0 : index
    %0 = vector.load %arg1[%c0, %c0_0] : memref<1x128xbf16, #tpu.memory_space<vmem>>, vector<1x128xbf16>
    %c0_1 = arith.constant 0 : index
    %c0_2 = arith.constant 0 : index
    %1 = vector.load %arg2[%c0_1, %c0_2] : memref<128x2048xbf16, #tpu.memory_space<vmem>>, vector<128x2048xbf16>
    %cst = arith.constant dense<0.000000e+00> : vector<1x2048xf32>
    %2 = tpu.matmul %0, %1, %cst {dimension_numbers = #tpu.dot_dimension_numbers<[1], [0], [0], [1], [0, 0, 1, 1], [], []>} : vector<1x128xbf16>, vector<128x2048xbf16>, vector<1x2048xf32> -> vector<1x2048xf32>
    %c0_3 = arith.constant 0 : index
    %c0_4 = arith.constant 0 : index
    %3 = vector.load %arg3[%c0_3, %c0_4] : memref<1x2048xf32, #tpu.memory_space<vmem>>, vector<1x2048xf32>
    %4 = arith.addf %2, %3 : vector<1x2048xf32>
    %c0_5 = arith.constant 0 : index
    %c0_6 = arith.constant 0 : index
    %5 = vector.load %arg4[%c0_5, %c0_6] : memref<1x2048xf32, #tpu.memory_space<vmem>>, vector<1x2048xf32>
    tpu.vector_store %arg4[%c0_5, %c0_6], %4 {strides = array<i32>} : memref<1x2048xf32, #tpu.memory_space<vmem>>, vector<1x2048xf32>,
    %6 = vector.shape_cast %4 : vector<1x2048xf32> to vector<1x1x2048xf32>
    %cst_7 = arith.constant dense<0xFF800000> : vector<1xf32>
    %7 = vector.multi_reduction <maximumf>, %6, %cst_7 [1, 2] : vector<1x1x2048xf32> to vector<1xf32>
    %8 = vector.shape_cast %7 : vector<1xf32> to vector<1x1x1xf32>
    %9 = vector.extract %8[0, 0, 0] : f32 from vector<1x1x1xf32>
    %10 = vector.broadcast %9 : f32 to vector<1x2048xf32>
    %11 = arith.subf %4, %10 : vector<1x2048xf32>
    %12 = math.exp %11 : vector<1x2048xf32>
    %13 = vector.shape_cast %12 : vector<1x2048xf32> to vector<1x1x2048xf32>
    %cst_8 = arith.constant dense<0.000000e+00> : vector<1xf32>
    %14 = vector.multi_reduction <add>, %13, %cst_8 [1, 2] : vector<1x1x2048xf32> to vector<1xf32>
    %15 = vector.shape_cast %14 : vector<1xf32> to vector<1x1x1xf32>
    %16 = vector.extract %15[0, 0, 0] : f32 from vector<1x1x1xf32>
    %17 = vector.broadcast %9 : f32 to vector<8x128xf32>
    %c0_9 = arith.constant 0 : index
    %c0_10 = arith.constant 0 : index
    %18 = vector.load %arg5[%c0_9, %c0_10] : memref<8x128xf32, #tpu.memory_space<vmem>>, vector<8x128xf32>
    tpu.vector_store %arg5[%c0_9, %c0_10], %17 {strides = array<i32>} : memref<8x128xf32, #tpu.memory_space<vmem>>, vector<8x128xf32>,
    %19 = vector.broadcast %16 : f32 to vector<8x128xf32>
    %c0_11 = arith.constant 0 : index
    %c0_12 = arith.constant 0 : index
    %20 = vector.load %arg6[%c0_11, %c0_12] : memref<8x128xf32, #tpu.memory_space<vmem>>, vector<8x128xf32>
    tpu.vector_store %arg6[%c0_11, %c0_12], %19 {strides = array<i32>} : memref<8x128xf32, #tpu.memory_space<vmem>>, vector<8x128xf32>,
    return
  }
  func.func @transform_0(%arg0: i32) -> (i32, i32) {
    %c0_i32 = arith.constant 0 : i32
    %c0_i32_0 = arith.constant 0 : i32
    %c0_i32_1 = arith.constant 0 : i32
    return %c0_i32, %c0_i32_0 : i32, i32
  }
  func.func @transform_1(%arg0: i32) -> (i32, i32) {
    %c0_i32 = arith.constant 0 : i32
    %c0_i32_0 = arith.constant 0 : i32
    return %c0_i32, %arg0 : i32, i32
  }
  func.func @transform_2(%arg0: i32) -> (i32, i32) {
    %c0_i32 = arith.constant 0 : i32
    %c0_i32_0 = arith.constant 0 : i32
    return %c0_i32, %arg0 : i32, i32
  }
  func.func @transform_3(%arg0: i32) -> (i32, i32) {
    %c0_i32 = arith.constant 0 : i32
    %c0_i32_0 = arith.constant 0 : i32
    return %c0_i32, %arg0 : i32, i32
  }
  func.func @transform_4(%arg0: i32) -> (i32, i32) {
    %c0_i32 = arith.constant 0 : i32
    %c0_i32_0 = arith.constant 0 : i32
    return %arg0, %c0_i32 : i32, i32
  }
  func.func @transform_5(%arg0: i32) -> (i32, i32) {
    %c0_i32 = arith.constant 0 : i32
    %c0_i32_0 = arith.constant 0 : i32
    return %arg0, %c0_i32 : i32, i32
  }
}

module attributes {stable_mosaic.version = 11 : i64} {
  func.func @gather_mean_kernel(%arg0: i32, %arg1: memref<8xi32, #tpu.memory_space<smem>>, %arg2: memref<5000x128xf32, #tpu.memory_space<any>>, %arg3: memref<1x128xbf16, #tpu.memory_space<vmem>>, %arg4: memref<8x128xf32, #tpu.memory_space<vmem>>, %arg5: memref<8x!tpu.dma_semaphore, #tpu.memory_space<semaphore_mem>>) attributes {dimension_semantics = [#tpu.dimension_semantics<arbitrary>], iteration_bounds = array<i64: 1>, scalar_prefetch = 1 : i64, scratch_operands = 2 : i64, tpu.core_type = #tpu.core_type<tc>, window_params = [{}, {pipeline_mode = #tpu.pipeline_mode<synchronous>, transform_indices = @transform_1, window_bounds = array<i64: 1, 128>}]} {
    %c0 = arith.constant 0 : index
    %0 = memref.load %arg1[%c0] : memref<8xi32, #tpu.memory_space<smem>>
    %c0_i32 = arith.constant 0 : i32
    %c4999_i32 = arith.constant 4999 : i32
    %1 = arith.maxsi %c0_i32, %0 : i32
    %2 = arith.minsi %c4999_i32, %1 : i32
    %c0_i32_0 = arith.constant 0 : i32
    %c0_i32_1 = arith.constant 0 : i32
    %3 = tpu.memref_slice %arg2[%2, %c0_i32_1] : memref<5000x128xf32, #tpu.memory_space<any>> -> memref<1x128xf32, #tpu.memory_space<any>>
    %c0_i32_2 = arith.constant 0 : i32
    %c0_i32_3 = arith.constant 0 : i32
    %4 = tpu.memref_slice %arg4[%c0_i32_2, %c0_i32_3] : memref<8x128xf32, #tpu.memory_space<vmem>> -> memref<1x128xf32, #tpu.memory_space<vmem>>
    %5 = tpu.memref_slice %arg5[%c0_i32_0] : memref<8x!tpu.dma_semaphore, #tpu.memory_space<semaphore_mem>> -> memref<1x!tpu.dma_semaphore, #tpu.memory_space<semaphore_mem>>
    %6 = tpu.memref_squeeze %5 : memref<1x!tpu.dma_semaphore, #tpu.memory_space<semaphore_mem>> -> memref<!tpu.dma_semaphore, #tpu.memory_space<semaphore_mem>>
    tpu.enqueue_dma source(%3 : memref<1x128xf32, #tpu.memory_space<any>>) target(%4 : memref<1x128xf32, #tpu.memory_space<vmem>>) target_semaphore(%6 : memref<!tpu.dma_semaphore, #tpu.memory_space<semaphore_mem>>)
    %c1 = arith.constant 1 : index
    %7 = memref.load %arg1[%c1] : memref<8xi32, #tpu.memory_space<smem>>
    %c0_i32_4 = arith.constant 0 : i32
    %c4999_i32_5 = arith.constant 4999 : i32
    %8 = arith.maxsi %c0_i32_4, %7 : i32
    %9 = arith.minsi %c4999_i32_5, %8 : i32
    %c1_i32 = arith.constant 1 : i32
    %c0_i32_6 = arith.constant 0 : i32
    %10 = tpu.memref_slice %arg2[%9, %c0_i32_6] : memref<5000x128xf32, #tpu.memory_space<any>> -> memref<1x128xf32, #tpu.memory_space<any>>
    %c1_i32_7 = arith.constant 1 : i32
    %c0_i32_8 = arith.constant 0 : i32
    %11 = tpu.memref_slice %arg4[%c1_i32_7, %c0_i32_8] : memref<8x128xf32, #tpu.memory_space<vmem>> -> memref<1x128xf32, #tpu.memory_space<vmem>>
    %12 = tpu.memref_slice %arg5[%c1_i32] : memref<8x!tpu.dma_semaphore, #tpu.memory_space<semaphore_mem>> -> memref<1x!tpu.dma_semaphore, #tpu.memory_space<semaphore_mem>>
    %13 = tpu.memref_squeeze %12 : memref<1x!tpu.dma_semaphore, #tpu.memory_space<semaphore_mem>> -> memref<!tpu.dma_semaphore, #tpu.memory_space<semaphore_mem>>
    tpu.enqueue_dma source(%10 : memref<1x128xf32, #tpu.memory_space<any>>) target(%11 : memref<1x128xf32, #tpu.memory_space<vmem>>) target_semaphore(%13 : memref<!tpu.dma_semaphore, #tpu.memory_space<semaphore_mem>>)
    %c2 = arith.constant 2 : index
    %14 = memref.load %arg1[%c2] : memref<8xi32, #tpu.memory_space<smem>>
    %c0_i32_9 = arith.constant 0 : i32
    %c4999_i32_10 = arith.constant 4999 : i32
    %15 = arith.maxsi %c0_i32_9, %14 : i32
    %16 = arith.minsi %c4999_i32_10, %15 : i32
    %c2_i32 = arith.constant 2 : i32
    %c0_i32_11 = arith.constant 0 : i32
    %17 = tpu.memref_slice %arg2[%16, %c0_i32_11] : memref<5000x128xf32, #tpu.memory_space<any>> -> memref<1x128xf32, #tpu.memory_space<any>>
    %c2_i32_12 = arith.constant 2 : i32
    %c0_i32_13 = arith.constant 0 : i32
    %18 = tpu.memref_slice %arg4[%c2_i32_12, %c0_i32_13] : memref<8x128xf32, #tpu.memory_space<vmem>> -> memref<1x128xf32, #tpu.memory_space<vmem>>
    %19 = tpu.memref_slice %arg5[%c2_i32] : memref<8x!tpu.dma_semaphore, #tpu.memory_space<semaphore_mem>> -> memref<1x!tpu.dma_semaphore, #tpu.memory_space<semaphore_mem>>
    %20 = tpu.memref_squeeze %19 : memref<1x!tpu.dma_semaphore, #tpu.memory_space<semaphore_mem>> -> memref<!tpu.dma_semaphore, #tpu.memory_space<semaphore_mem>>
    tpu.enqueue_dma source(%17 : memref<1x128xf32, #tpu.memory_space<any>>) target(%18 : memref<1x128xf32, #tpu.memory_space<vmem>>) target_semaphore(%20 : memref<!tpu.dma_semaphore, #tpu.memory_space<semaphore_mem>>)
    %c3 = arith.constant 3 : index
    %21 = memref.load %arg1[%c3] : memref<8xi32, #tpu.memory_space<smem>>
    %c0_i32_14 = arith.constant 0 : i32
    %c4999_i32_15 = arith.constant 4999 : i32
    %22 = arith.maxsi %c0_i32_14, %21 : i32
    %23 = arith.minsi %c4999_i32_15, %22 : i32
    %c3_i32 = arith.constant 3 : i32
    %c0_i32_16 = arith.constant 0 : i32
    %24 = tpu.memref_slice %arg2[%23, %c0_i32_16] : memref<5000x128xf32, #tpu.memory_space<any>> -> memref<1x128xf32, #tpu.memory_space<any>>
    %c3_i32_17 = arith.constant 3 : i32
    %c0_i32_18 = arith.constant 0 : i32
    %25 = tpu.memref_slice %arg4[%c3_i32_17, %c0_i32_18] : memref<8x128xf32, #tpu.memory_space<vmem>> -> memref<1x128xf32, #tpu.memory_space<vmem>>
    %26 = tpu.memref_slice %arg5[%c3_i32] : memref<8x!tpu.dma_semaphore, #tpu.memory_space<semaphore_mem>> -> memref<1x!tpu.dma_semaphore, #tpu.memory_space<semaphore_mem>>
    %27 = tpu.memref_squeeze %26 : memref<1x!tpu.dma_semaphore, #tpu.memory_space<semaphore_mem>> -> memref<!tpu.dma_semaphore, #tpu.memory_space<semaphore_mem>>
    tpu.enqueue_dma source(%24 : memref<1x128xf32, #tpu.memory_space<any>>) target(%25 : memref<1x128xf32, #tpu.memory_space<vmem>>) target_semaphore(%27 : memref<!tpu.dma_semaphore, #tpu.memory_space<semaphore_mem>>)
    %c4 = arith.constant 4 : index
    %28 = memref.load %arg1[%c4] : memref<8xi32, #tpu.memory_space<smem>>
    %c0_i32_19 = arith.constant 0 : i32
    %c4999_i32_20 = arith.constant 4999 : i32
    %29 = arith.maxsi %c0_i32_19, %28 : i32
    %30 = arith.minsi %c4999_i32_20, %29 : i32
    %c4_i32 = arith.constant 4 : i32
    %c0_i32_21 = arith.constant 0 : i32
    %31 = tpu.memref_slice %arg2[%30, %c0_i32_21] : memref<5000x128xf32, #tpu.memory_space<any>> -> memref<1x128xf32, #tpu.memory_space<any>>
    %c4_i32_22 = arith.constant 4 : i32
    %c0_i32_23 = arith.constant 0 : i32
    %32 = tpu.memref_slice %arg4[%c4_i32_22, %c0_i32_23] : memref<8x128xf32, #tpu.memory_space<vmem>> -> memref<1x128xf32, #tpu.memory_space<vmem>>
    %33 = tpu.memref_slice %arg5[%c4_i32] : memref<8x!tpu.dma_semaphore, #tpu.memory_space<semaphore_mem>> -> memref<1x!tpu.dma_semaphore, #tpu.memory_space<semaphore_mem>>
    %34 = tpu.memref_squeeze %33 : memref<1x!tpu.dma_semaphore, #tpu.memory_space<semaphore_mem>> -> memref<!tpu.dma_semaphore, #tpu.memory_space<semaphore_mem>>
    tpu.enqueue_dma source(%31 : memref<1x128xf32, #tpu.memory_space<any>>) target(%32 : memref<1x128xf32, #tpu.memory_space<vmem>>) target_semaphore(%34 : memref<!tpu.dma_semaphore, #tpu.memory_space<semaphore_mem>>)
    %c5 = arith.constant 5 : index
    %35 = memref.load %arg1[%c5] : memref<8xi32, #tpu.memory_space<smem>>
    %c0_i32_24 = arith.constant 0 : i32
    %c4999_i32_25 = arith.constant 4999 : i32
    %36 = arith.maxsi %c0_i32_24, %35 : i32
    %37 = arith.minsi %c4999_i32_25, %36 : i32
    %c5_i32 = arith.constant 5 : i32
    %c0_i32_26 = arith.constant 0 : i32
    %38 = tpu.memref_slice %arg2[%37, %c0_i32_26] : memref<5000x128xf32, #tpu.memory_space<any>> -> memref<1x128xf32, #tpu.memory_space<any>>
    %c5_i32_27 = arith.constant 5 : i32
    %c0_i32_28 = arith.constant 0 : i32
    %39 = tpu.memref_slice %arg4[%c5_i32_27, %c0_i32_28] : memref<8x128xf32, #tpu.memory_space<vmem>> -> memref<1x128xf32, #tpu.memory_space<vmem>>
    %40 = tpu.memref_slice %arg5[%c5_i32] : memref<8x!tpu.dma_semaphore, #tpu.memory_space<semaphore_mem>> -> memref<1x!tpu.dma_semaphore, #tpu.memory_space<semaphore_mem>>
    %41 = tpu.memref_squeeze %40 : memref<1x!tpu.dma_semaphore, #tpu.memory_space<semaphore_mem>> -> memref<!tpu.dma_semaphore, #tpu.memory_space<semaphore_mem>>
    tpu.enqueue_dma source(%38 : memref<1x128xf32, #tpu.memory_space<any>>) target(%39 : memref<1x128xf32, #tpu.memory_space<vmem>>) target_semaphore(%41 : memref<!tpu.dma_semaphore, #tpu.memory_space<semaphore_mem>>)
    %c6 = arith.constant 6 : index
    %42 = memref.load %arg1[%c6] : memref<8xi32, #tpu.memory_space<smem>>
    %c0_i32_29 = arith.constant 0 : i32
    %c4999_i32_30 = arith.constant 4999 : i32
    %43 = arith.maxsi %c0_i32_29, %42 : i32
    %44 = arith.minsi %c4999_i32_30, %43 : i32
    %c6_i32 = arith.constant 6 : i32
    %c0_i32_31 = arith.constant 0 : i32
    %45 = tpu.memref_slice %arg2[%44, %c0_i32_31] : memref<5000x128xf32, #tpu.memory_space<any>> -> memref<1x128xf32, #tpu.memory_space<any>>
    %c6_i32_32 = arith.constant 6 : i32
    %c0_i32_33 = arith.constant 0 : i32
    %46 = tpu.memref_slice %arg4[%c6_i32_32, %c0_i32_33] : memref<8x128xf32, #tpu.memory_space<vmem>> -> memref<1x128xf32, #tpu.memory_space<vmem>>
    %47 = tpu.memref_slice %arg5[%c6_i32] : memref<8x!tpu.dma_semaphore, #tpu.memory_space<semaphore_mem>> -> memref<1x!tpu.dma_semaphore, #tpu.memory_space<semaphore_mem>>
    %48 = tpu.memref_squeeze %47 : memref<1x!tpu.dma_semaphore, #tpu.memory_space<semaphore_mem>> -> memref<!tpu.dma_semaphore, #tpu.memory_space<semaphore_mem>>
    tpu.enqueue_dma source(%45 : memref<1x128xf32, #tpu.memory_space<any>>) target(%46 : memref<1x128xf32, #tpu.memory_space<vmem>>) target_semaphore(%48 : memref<!tpu.dma_semaphore, #tpu.memory_space<semaphore_mem>>)
    %c7 = arith.constant 7 : index
    %49 = memref.load %arg1[%c7] : memref<8xi32, #tpu.memory_space<smem>>
    %c0_i32_34 = arith.constant 0 : i32
    %c4999_i32_35 = arith.constant 4999 : i32
    %50 = arith.maxsi %c0_i32_34, %49 : i32
    %51 = arith.minsi %c4999_i32_35, %50 : i32
    %c7_i32 = arith.constant 7 : i32
    %c0_i32_36 = arith.constant 0 : i32
    %52 = tpu.memref_slice %arg2[%51, %c0_i32_36] : memref<5000x128xf32, #tpu.memory_space<any>> -> memref<1x128xf32, #tpu.memory_space<any>>
    %c7_i32_37 = arith.constant 7 : i32
    %c0_i32_38 = arith.constant 0 : i32
    %53 = tpu.memref_slice %arg4[%c7_i32_37, %c0_i32_38] : memref<8x128xf32, #tpu.memory_space<vmem>> -> memref<1x128xf32, #tpu.memory_space<vmem>>
    %54 = tpu.memref_slice %arg5[%c7_i32] : memref<8x!tpu.dma_semaphore, #tpu.memory_space<semaphore_mem>> -> memref<1x!tpu.dma_semaphore, #tpu.memory_space<semaphore_mem>>
    %55 = tpu.memref_squeeze %54 : memref<1x!tpu.dma_semaphore, #tpu.memory_space<semaphore_mem>> -> memref<!tpu.dma_semaphore, #tpu.memory_space<semaphore_mem>>
    tpu.enqueue_dma source(%52 : memref<1x128xf32, #tpu.memory_space<any>>) target(%53 : memref<1x128xf32, #tpu.memory_space<vmem>>) target_semaphore(%55 : memref<!tpu.dma_semaphore, #tpu.memory_space<semaphore_mem>>)
    %c0_i32_39 = arith.constant 0 : i32
    %c0_i32_40 = arith.constant 0 : i32
    %56 = tpu.memref_slice %arg2[%2, %c0_i32_40] : memref<5000x128xf32, #tpu.memory_space<any>> -> memref<1x128xf32, #tpu.memory_space<any>>
    %c0_i32_41 = arith.constant 0 : i32
    %c0_i32_42 = arith.constant 0 : i32
    %57 = tpu.memref_slice %arg4[%c0_i32_41, %c0_i32_42] : memref<8x128xf32, #tpu.memory_space<vmem>> -> memref<1x128xf32, #tpu.memory_space<vmem>>
    %58 = tpu.memref_slice %arg5[%c0_i32_39] : memref<8x!tpu.dma_semaphore, #tpu.memory_space<semaphore_mem>> -> memref<1x!tpu.dma_semaphore, #tpu.memory_space<semaphore_mem>>
    %59 = tpu.memref_squeeze %58 : memref<1x!tpu.dma_semaphore, #tpu.memory_space<semaphore_mem>> -> memref<!tpu.dma_semaphore, #tpu.memory_space<semaphore_mem>>
    tpu.wait_dma2 semaphore(%59 : memref<!tpu.dma_semaphore, #tpu.memory_space<semaphore_mem>>) src(%56 : memref<1x128xf32, #tpu.memory_space<any>>) dst(%57 : memref<1x128xf32, #tpu.memory_space<vmem>>)
    %c1_i32_43 = arith.constant 1 : i32
    %c0_i32_44 = arith.constant 0 : i32
    %60 = tpu.memref_slice %arg2[%9, %c0_i32_44] : memref<5000x128xf32, #tpu.memory_space<any>> -> memref<1x128xf32, #tpu.memory_space<any>>
    %c1_i32_45 = arith.constant 1 : i32
    %c0_i32_46 = arith.constant 0 : i32
    %61 = tpu.memref_slice %arg4[%c1_i32_45, %c0_i32_46] : memref<8x128xf32, #tpu.memory_space<vmem>> -> memref<1x128xf32, #tpu.memory_space<vmem>>
    %62 = tpu.memref_slice %arg5[%c1_i32_43] : memref<8x!tpu.dma_semaphore, #tpu.memory_space<semaphore_mem>> -> memref<1x!tpu.dma_semaphore, #tpu.memory_space<semaphore_mem>>
    %63 = tpu.memref_squeeze %62 : memref<1x!tpu.dma_semaphore, #tpu.memory_space<semaphore_mem>> -> memref<!tpu.dma_semaphore, #tpu.memory_space<semaphore_mem>>
    tpu.wait_dma2 semaphore(%63 : memref<!tpu.dma_semaphore, #tpu.memory_space<semaphore_mem>>) src(%60 : memref<1x128xf32, #tpu.memory_space<any>>) dst(%61 : memref<1x128xf32, #tpu.memory_space<vmem>>)
    %c2_i32_47 = arith.constant 2 : i32
    %c0_i32_48 = arith.constant 0 : i32
    %64 = tpu.memref_slice %arg2[%16, %c0_i32_48] : memref<5000x128xf32, #tpu.memory_space<any>> -> memref<1x128xf32, #tpu.memory_space<any>>
    %c2_i32_49 = arith.constant 2 : i32
    %c0_i32_50 = arith.constant 0 : i32
    %65 = tpu.memref_slice %arg4[%c2_i32_49, %c0_i32_50] : memref<8x128xf32, #tpu.memory_space<vmem>> -> memref<1x128xf32, #tpu.memory_space<vmem>>
    %66 = tpu.memref_slice %arg5[%c2_i32_47] : memref<8x!tpu.dma_semaphore, #tpu.memory_space<semaphore_mem>> -> memref<1x!tpu.dma_semaphore, #tpu.memory_space<semaphore_mem>>
    %67 = tpu.memref_squeeze %66 : memref<1x!tpu.dma_semaphore, #tpu.memory_space<semaphore_mem>> -> memref<!tpu.dma_semaphore, #tpu.memory_space<semaphore_mem>>
    tpu.wait_dma2 semaphore(%67 : memref<!tpu.dma_semaphore, #tpu.memory_space<semaphore_mem>>) src(%64 : memref<1x128xf32, #tpu.memory_space<any>>) dst(%65 : memref<1x128xf32, #tpu.memory_space<vmem>>)
    %c3_i32_51 = arith.constant 3 : i32
    %c0_i32_52 = arith.constant 0 : i32
    %68 = tpu.memref_slice %arg2[%23, %c0_i32_52] : memref<5000x128xf32, #tpu.memory_space<any>> -> memref<1x128xf32, #tpu.memory_space<any>>
    %c3_i32_53 = arith.constant 3 : i32
    %c0_i32_54 = arith.constant 0 : i32
    %69 = tpu.memref_slice %arg4[%c3_i32_53, %c0_i32_54] : memref<8x128xf32, #tpu.memory_space<vmem>> -> memref<1x128xf32, #tpu.memory_space<vmem>>
    %70 = tpu.memref_slice %arg5[%c3_i32_51] : memref<8x!tpu.dma_semaphore, #tpu.memory_space<semaphore_mem>> -> memref<1x!tpu.dma_semaphore, #tpu.memory_space<semaphore_mem>>
    %71 = tpu.memref_squeeze %70 : memref<1x!tpu.dma_semaphore, #tpu.memory_space<semaphore_mem>> -> memref<!tpu.dma_semaphore, #tpu.memory_space<semaphore_mem>>
    tpu.wait_dma2 semaphore(%71 : memref<!tpu.dma_semaphore, #tpu.memory_space<semaphore_mem>>) src(%68 : memref<1x128xf32, #tpu.memory_space<any>>) dst(%69 : memref<1x128xf32, #tpu.memory_space<vmem>>)
    %c4_i32_55 = arith.constant 4 : i32
    %c0_i32_56 = arith.constant 0 : i32
    %72 = tpu.memref_slice %arg2[%30, %c0_i32_56] : memref<5000x128xf32, #tpu.memory_space<any>> -> memref<1x128xf32, #tpu.memory_space<any>>
    %c4_i32_57 = arith.constant 4 : i32
    %c0_i32_58 = arith.constant 0 : i32
    %73 = tpu.memref_slice %arg4[%c4_i32_57, %c0_i32_58] : memref<8x128xf32, #tpu.memory_space<vmem>> -> memref<1x128xf32, #tpu.memory_space<vmem>>
    %74 = tpu.memref_slice %arg5[%c4_i32_55] : memref<8x!tpu.dma_semaphore, #tpu.memory_space<semaphore_mem>> -> memref<1x!tpu.dma_semaphore, #tpu.memory_space<semaphore_mem>>
    %75 = tpu.memref_squeeze %74 : memref<1x!tpu.dma_semaphore, #tpu.memory_space<semaphore_mem>> -> memref<!tpu.dma_semaphore, #tpu.memory_space<semaphore_mem>>
    tpu.wait_dma2 semaphore(%75 : memref<!tpu.dma_semaphore, #tpu.memory_space<semaphore_mem>>) src(%72 : memref<1x128xf32, #tpu.memory_space<any>>) dst(%73 : memref<1x128xf32, #tpu.memory_space<vmem>>)
    %c5_i32_59 = arith.constant 5 : i32
    %c0_i32_60 = arith.constant 0 : i32
    %76 = tpu.memref_slice %arg2[%37, %c0_i32_60] : memref<5000x128xf32, #tpu.memory_space<any>> -> memref<1x128xf32, #tpu.memory_space<any>>
    %c5_i32_61 = arith.constant 5 : i32
    %c0_i32_62 = arith.constant 0 : i32
    %77 = tpu.memref_slice %arg4[%c5_i32_61, %c0_i32_62] : memref<8x128xf32, #tpu.memory_space<vmem>> -> memref<1x128xf32, #tpu.memory_space<vmem>>
    %78 = tpu.memref_slice %arg5[%c5_i32_59] : memref<8x!tpu.dma_semaphore, #tpu.memory_space<semaphore_mem>> -> memref<1x!tpu.dma_semaphore, #tpu.memory_space<semaphore_mem>>
    %79 = tpu.memref_squeeze %78 : memref<1x!tpu.dma_semaphore, #tpu.memory_space<semaphore_mem>> -> memref<!tpu.dma_semaphore, #tpu.memory_space<semaphore_mem>>
    tpu.wait_dma2 semaphore(%79 : memref<!tpu.dma_semaphore, #tpu.memory_space<semaphore_mem>>) src(%76 : memref<1x128xf32, #tpu.memory_space<any>>) dst(%77 : memref<1x128xf32, #tpu.memory_space<vmem>>)
    %c6_i32_63 = arith.constant 6 : i32
    %c0_i32_64 = arith.constant 0 : i32
    %80 = tpu.memref_slice %arg2[%44, %c0_i32_64] : memref<5000x128xf32, #tpu.memory_space<any>> -> memref<1x128xf32, #tpu.memory_space<any>>
    %c6_i32_65 = arith.constant 6 : i32
    %c0_i32_66 = arith.constant 0 : i32
    %81 = tpu.memref_slice %arg4[%c6_i32_65, %c0_i32_66] : memref<8x128xf32, #tpu.memory_space<vmem>> -> memref<1x128xf32, #tpu.memory_space<vmem>>
    %82 = tpu.memref_slice %arg5[%c6_i32_63] : memref<8x!tpu.dma_semaphore, #tpu.memory_space<semaphore_mem>> -> memref<1x!tpu.dma_semaphore, #tpu.memory_space<semaphore_mem>>
    %83 = tpu.memref_squeeze %82 : memref<1x!tpu.dma_semaphore, #tpu.memory_space<semaphore_mem>> -> memref<!tpu.dma_semaphore, #tpu.memory_space<semaphore_mem>>
    tpu.wait_dma2 semaphore(%83 : memref<!tpu.dma_semaphore, #tpu.memory_space<semaphore_mem>>) src(%80 : memref<1x128xf32, #tpu.memory_space<any>>) dst(%81 : memref<1x128xf32, #tpu.memory_space<vmem>>)
    %c7_i32_67 = arith.constant 7 : i32
    %c0_i32_68 = arith.constant 0 : i32
    %84 = tpu.memref_slice %arg2[%51, %c0_i32_68] : memref<5000x128xf32, #tpu.memory_space<any>> -> memref<1x128xf32, #tpu.memory_space<any>>
    %c7_i32_69 = arith.constant 7 : i32
    %c0_i32_70 = arith.constant 0 : i32
    %85 = tpu.memref_slice %arg4[%c7_i32_69, %c0_i32_70] : memref<8x128xf32, #tpu.memory_space<vmem>> -> memref<1x128xf32, #tpu.memory_space<vmem>>
    %86 = tpu.memref_slice %arg5[%c7_i32_67] : memref<8x!tpu.dma_semaphore, #tpu.memory_space<semaphore_mem>> -> memref<1x!tpu.dma_semaphore, #tpu.memory_space<semaphore_mem>>
    %87 = tpu.memref_squeeze %86 : memref<1x!tpu.dma_semaphore, #tpu.memory_space<semaphore_mem>> -> memref<!tpu.dma_semaphore, #tpu.memory_space<semaphore_mem>>
    tpu.wait_dma2 semaphore(%87 : memref<!tpu.dma_semaphore, #tpu.memory_space<semaphore_mem>>) src(%84 : memref<1x128xf32, #tpu.memory_space<any>>) dst(%85 : memref<1x128xf32, #tpu.memory_space<vmem>>)
    %c0_71 = arith.constant 0 : index
    %c0_72 = arith.constant 0 : index
    %88 = vector.load %arg4[%c0_71, %c0_72] : memref<8x128xf32, #tpu.memory_space<vmem>>, vector<8x128xf32>
    %cst = arith.constant dense<0.000000e+00> : vector<128xf32>
    %89 = vector.multi_reduction <add>, %88, %cst [0] : vector<8x128xf32> to vector<128xf32>
    %90 = vector.shape_cast %89 : vector<128xf32> to vector<1x128xf32>
    %cst_73 = arith.constant 1.250000e-01 : f32
    %91 = vector.broadcast %cst_73 : f32 to vector<1x128xf32>
    %92 = arith.mulf %90, %91 : vector<1x128xf32>
    %93 = arith.truncf %92 : vector<1x128xf32> to vector<1x128xbf16>
    %c0_74 = arith.constant 0 : index
    %c0_75 = arith.constant 0 : index
    %94 = vector.load %arg3[%c0_74, %c0_75] : memref<1x128xbf16, #tpu.memory_space<vmem>>, vector<1x128xbf16>
    tpu.vector_store %arg3[%c0_74, %c0_75], %93 {strides = array<i32>} : memref<1x128xbf16, #tpu.memory_space<vmem>>, vector<1x128xbf16>,
    return
  }
  func.func @transform_1(%arg0: i32, %arg1: memref<8xi32, #tpu.memory_space<smem>>) -> (i32, i32) {
    %c0_i32 = arith.constant 0 : i32
    %c0_i32_0 = arith.constant 0 : i32
    %c0_i32_1 = arith.constant 0 : i32
    return %c0_i32, %c0_i32_0 : i32, i32
  }
}

</mosaic_0001>

<bundles_post_ra>
// kernel: cbow_forward.3
= control target key start
LH: loop header
LB: loop body
LE: loop exit
PB: predicated region body
PF: predicated region fallthrough
CT: control target
= control target key end

     0   :  { %s767_s0 = inlined_call_operand.hbm [shape: s32[8], index: 0, kind: input, shape index: {}]   ;;  %s768_s1 = inlined_call_operand.hbm [shape: f32[5000,128], index: 1, kind: input, shape index: {}]   ;;  %s769_s2 = inlined_call_operand.vmem [shape: bf16[1,128], index: 2, kind: output, shape index: {}]  }
   0x1   :  { %s364_s11 = scalar_lea.hbm %s767_s0, 16 }
   0x2   :  { %p365_p0 = scmp.ne.s32.totalorder %s767_s0, %s364_s11  ;;  %p368_p1 = scmp.lt.u32.totalorder %s364_s11, %s767_s0 }
   0x4   :  { %p370_p2 = pnand %p368_p1, %p365_p0 }
   0x6   :  { %373 = shalt.err (!%p370_p2)  }
   0x7   :  { %s584_s16 = smov [#allocation5]  }
   0x8   :  { %8 = dma.hbm_to_smem %s767_s0, 16, %s584_s16, [#allocation4] }
   0x9   :  { %566 = dma.done.wait [#allocation4], 16 }
   0xa   :  { %567 = vsyncadd [#allocation4], 4294967280 }
   0xb   :  { %10 = sfence }
   0xc   :  { %s11_s19 = sld [smem:[#allocation5]]  ;;  %s585_s20 = smov [#allocation2]  }
   0xd   :  { %s25_s21 = sshll.u32 %s585_s20, 4  ;;  %s282_s22 = sld [smem:[#allocation5 + $0x1]]  ;;  %s620_s21 = int_to_ptr.vmem [resolvable:$true] %s25_s21 }
   0xe   :  { %s586_s23 = smov [#allocation2 + $0x1]   ;;  %s622_s25 = sld [smem:[#allocation5 + $0x2]] }
   0xf   :  { %s45_s24 = sshll.u32 %s586_s23, 4  ;;  %s587_s26 = smov [#allocation2 + $0x2]   ;;  %s624_s24 = int_to_ptr.vmem [resolvable:$true] %s45_s24 }
  0x10   :  { %s626_s27 = sshll.u32 %s587_s26, 4  ;;  %s628_s0 = sld [smem:[#allocation5 + $0x3]]  ;;  %s66_s27 = int_to_ptr.vmem [resolvable:$true] %s626_s27 }
  0x11   :  { %s637_s8 = scalar_lea.hbm %s768_s1, 80000 }
  0x12   :  { %p12_p3 = scmp.gt.s32.totalorder %s11_s19, 0  ;;  %p276_p4 = scmp.lt.s32.totalorder %s11_s19, 4999 }
  0x13   :  { %p30_p5 = scmp.gt.s32.totalorder %s282_s22, 0  ;;  %p283_p6 = scmp.lt.s32.totalorder %s282_s22, 4999 }
  0x14   :  { %s772_s19 = smov (!%p12_p3, %s11_s19), 0  ;;  %p50_p7 = scmp.gt.s32.totalorder %s622_s25, 0 }
  0x15   :  { %s774_s22 = smov (!%p30_p5, %s282_s22), 0  ;;  %s776_s19 = smov (!%p276_p4, %s772_s19), 4999 }
  0x16   :  { %s778_s22 = smov (!%p283_p6, %s774_s22), 4999  ;;  %s281_s28 = sshll.u32 %s776_s19, 4 }
  0x17   :  { %s17_s3 = scalar_lea.hbm %s768_s1, %s281_s28  ;;  %s288_s4 = sshll.u32 %s778_s22, 4 }
  0x18   :  { %s374_s5 = scalar_lea.hbm %s17_s3, 16  ;;  %p377_p9 = scmp.lt.u32.totalorder %s17_s3, %s768_s1 }
  0x19   :  { %p375_p8 = scmp.ne.s32.totalorder %s17_s3, %s374_s5  ;;  %p378_p10 = scmp.lt.u32.totalorder %s637_s8, %s374_s5 }
  0x1a   :  { %p380_p12 = scmp.lt.u32.totalorder %s374_s5, %s17_s3 }
  0x1b   :  { %p379_p11 = por %p378_p10, %p377_p9 }
  0x1d   :  { %p381_p13 = por %p380_p12, %p379_p11 }
  0x1f   :  { %p382_p0 = pnand %p381_p13, %p375_p8 }
  0x21   :  { %385 = shalt.err (!%p382_p0)  }
  0x22   :  { %s386_s11 = scalar_lea.vmem %s620_s21, 16  ;;  %s646_s12 = scalar_lea.vmem %s620_s21, 128 }
  0x23   :  { %p387_p1 = scmp.ne.s32.totalorder %s620_s21, %s386_s11  ;;  %p391_p2 = scmp.lt.s32.totalorder %s620_s21, %s620_s21 }
  0x24   :  { %p392_p3 = scmp.lt.s32.totalorder %s646_s12, %s386_s11 }
  0x26   :  { %p393_p4 = por %p392_p3, %p391_p2 }
  0x28   :  { %p394_p5 = pnand %p393_p4, %p387_p1 }
  0x2a   :  { %397 = shalt.err (!%p394_p5)  }
  0x2b   :  { %28 = dma.hbm_to_vmem [thread:$0]  %s17_s3, 16, %s620_s21, [#allocation3] }
  0x2c   :  { %s35_s15 = scalar_lea.hbm %s768_s1, %s288_s4  ;;  %p290_p6 = scmp.lt.s32.totalorder %s622_s25, 4999 }
  0x2d   :  { %s398_s16 = scalar_lea.hbm %s35_s15, 16  ;;  %p401_p9 = scmp.lt.u32.totalorder %s35_s15, %s768_s1 }
  0x2e   :  { %p399_p8 = scmp.ne.s32.totalorder %s35_s15, %s398_s16  ;;  %p402_p10 = scmp.lt.u32.totalorder %s637_s8, %s398_s16 }
  0x2f   :  { %p404_p12 = scmp.lt.u32.totalorder %s398_s16, %s35_s15 }
  0x30   :  { %p403_p11 = por %p402_p10, %p401_p9 }
  0x32   :  { %p405_p13 = por %p404_p12, %p403_p11 }
  0x34   :  { %p406_p0 = pnand %p405_p13, %p399_p8 }
  0x36   :  { %409 = shalt.err (!%p406_p0)  }
  0x37   :  { %s410_s19 = scalar_lea.vmem %s624_s24, 16  ;;  %p415_p2 = scmp.lt.s32.totalorder %s624_s24, %s620_s21 }
  0x38   :  { %p411_p1 = scmp.ne.s32.totalorder %s624_s24, %s410_s19  ;;  %p416_p3 = scmp.lt.s32.totalorder %s646_s12, %s410_s19 }
  0x3a   :  { %p417_p4 = por %p416_p3, %p415_p2 }
  0x3c   :  { %p418_p5 = pnand %p417_p4, %p411_p1 }
  0x3e   :  { %421 = shalt.err (!%p418_p5)  }
  0x3f   :  { %48 = dma.hbm_to_vmem [thread:$0]  %s35_s15, 16, %s624_s24, [#allocation3 + $0x1] }
  0x40   :  { %s51_s20 = scalar_select %p50_p7, %s622_s25, 0 }
  0x41   :  { %p70_p8 = scmp.gt.s32.totalorder %s628_s0, 0  ;;  %p297_p9 = scmp.lt.s32.totalorder %s628_s0, 4999 }
  0x42   :  { %s780_s20 = smov (!%p290_p6, %s51_s20), 4999 }
  0x43   :  { %s71_s22 = scalar_select %p70_p8, %s628_s0, 0 }
  0x44   :  { %s295_s23 = sshll.u32 %s780_s20, 4 }
  0x45   :  { %s55_s29 = scalar_lea.hbm %s768_s1, %s295_s23 }
  0x46   :  { %s422_s30 = scalar_lea.hbm %s55_s29, 16  ;;  %p425_p11 = scmp.lt.u32.totalorder %s55_s29, %s768_s1 }
  0x47   :  { %p423_p10 = scmp.ne.s32.totalorder %s55_s29, %s422_s30  ;;  %p426_p12 = scmp.lt.u32.totalorder %s637_s8, %s422_s30 }
  0x48   :  { %p428_p7 = scmp.lt.u32.totalorder %s422_s30, %s55_s29 }
  0x49   :  { %p427_p13 = por %p426_p12, %p425_p11 }
  0x4b   :  { %p429_p0 = por %p428_p7, %p427_p13 }
  0x4d   :  { %p430_p1 = pnand %p429_p0, %p423_p10 }
  0x4f   :  { %433 = shalt.err (!%p430_p1)  }
  0x50   :  { %s434_s24 = scalar_lea.vmem %s66_s27, 16  ;;  %p439_p2 = scmp.lt.s32.totalorder %s66_s27, %s620_s21 }
  0x51   :  { %p435_p6 = scmp.ne.s32.totalorder %s66_s27, %s434_s24  ;;  %p440_p3 = scmp.lt.s32.totalorder %s646_s12, %s434_s24 }
  0x53   :  { %p441_p4 = por %p440_p3, %p439_p2 }
  0x55   :  { %p442_p5 = pnand %p441_p4, %p435_p6 }
  0x57   :  { %445 = shalt.err (!%p442_p5)  }
  0x58   :  { %68 = dma.hbm_to_vmem [thread:$0]  %s55_s29, 16, %s66_s27, [#allocation3 + $0x2] }
  0x59   :  { %s782_s22 = smov (!%p297_p9, %s71_s22), 4999  ;;  %s588_s25 = smov [#allocation2 + $0x3]  }
  0x5a   :  { %s85_s5 = sshll.u32 %s588_s25, 4  ;;  %s686_s6 = sld [smem:[#allocation5 + $0x4]]  ;;  %s86_s5 = int_to_ptr.vmem [resolvable:$true] %s85_s5 }
  0x5b   :  { %s302_s7 = sshll.u32 %s782_s22, 4 }
  0x5c   :  { %s75_s11 = scalar_lea.hbm %s768_s1, %s302_s7 }
  0x5d   :  { %s446_s13 = scalar_lea.hbm %s75_s11, 16  ;;  %p449_p10 = scmp.lt.u32.totalorder %s75_s11, %s768_s1 }
  0x5e   :  { %p447_p8 = scmp.ne.s32.totalorder %s75_s11, %s446_s13  ;;  %p450_p11 = scmp.lt.u32.totalorder %s637_s8, %s446_s13 }
  0x5f   :  { %p452_p13 = scmp.lt.u32.totalorder %s446_s13, %s75_s11 }
  0x60   :  { %p451_p12 = por %p450_p11, %p449_p10 }
  0x62   :  { %p453_p9 = por %p452_p13, %p451_p12 }
  0x64   :  { %p454_p7 = pnand %p453_p9, %p447_p8 }
  0x66   :  { %457 = shalt.err (!%p454_p7)  }
  0x67   :  { %s458_s27 = scalar_lea.vmem %s86_s5, 16  ;;  %p463_p1 = scmp.lt.s32.totalorder %s86_s5, %s620_s21 }
  0x68   :  { %p459_p0 = scmp.ne.s32.totalorder %s86_s5, %s458_s27  ;;  %p464_p6 = scmp.lt.s32.totalorder %s646_s12, %s458_s27 }
  0x6a   :  { %p465_p2 = por %p464_p6, %p463_p1 }
  0x6c   :  { %p466_p3 = pnand %p465_p2, %p459_p0 }
  0x6e   :  { %469 = shalt.err (!%p466_p3)  }
  0x6f   :  { %88 = dma.hbm_to_vmem [thread:$0]  %s75_s11, 16, %s86_s5, [#allocation3 + $0x3] }
  0x70   :  { %s697_s0 = sld [smem:[#allocation5 + $0x5]]  ;;  %s589_s16 = smov [#allocation2 + $0x4]  }
  0x71   :  { %s105_s17 = sshll.u32 %s589_s16, 4  ;;  %p90_p4 = scmp.gt.s32.totalorder %s686_s6, 0  ;;  %s106_s17 = int_to_ptr.vmem [resolvable:$true] %s105_s17 }
  0x72   :  { %p304_p5 = scmp.lt.s32.totalorder %s686_s6, 4999  ;;  %s701_s18 = sld [smem:[#allocation5 + $0x6]] }
  0x73   :  { %s784_s6 = smov (!%p90_p4, %s686_s6), 0  ;;  %s590_s19 = smov [#allocation2 + $0x5]  }
  0x74   :  { %s125_s20 = sshll.u32 %s590_s19, 4  ;;  %s786_s6 = smov (!%p304_p5, %s784_s6), 4999  ;;  %s126_s20 = int_to_ptr.vmem [resolvable:$true] %s125_s20 }
  0x75   :  { %s309_s22 = sshll.u32 %s786_s6, 4 }
  0x76   :  { %p110_p8 = scmp.gt.s32.totalorder %s697_s0, 0  ;;  %s95_s28 = scalar_lea.hbm %s768_s1, %s309_s22 }
  0x77   :  { %s470_s29 = scalar_lea.hbm %s95_s28, 16  ;;  %p473_p13 = scmp.lt.u32.totalorder %s95_s28, %s768_s1 }
  0x78   :  { %p130_p11 = scmp.gt.s32.totalorder %s701_s18, 0  ;;  %p471_p12 = scmp.ne.s32.totalorder %s95_s28, %s470_s29 }
  0x79   :  { %p474_p9 = scmp.lt.u32.totalorder %s637_s8, %s470_s29  ;;  %p476_p0 = scmp.lt.u32.totalorder %s470_s29, %s95_s28 }
  0x7b   :  { %p475_p7 = por %p474_p9, %p473_p13 }
  0x7d   :  { %p477_p1 = por %p476_p0, %p475_p7 }
  0x7f   :  { %p478_p6 = pnand %p477_p1, %p471_p12 }
  0x81   :  { %481 = shalt.err (!%p478_p6)  }
  0x82   :  { %s482_s4 = scalar_lea.vmem %s106_s17, 16  ;;  %p487_p3 = scmp.lt.s32.totalorder %s106_s17, %s620_s21 }
  0x83   :  { %p483_p2 = scmp.ne.s32.totalorder %s106_s17, %s482_s4  ;;  %p488_p4 = scmp.lt.s32.totalorder %s646_s12, %s482_s4 }
  0x85   :  { %p489_p5 = por %p488_p4, %p487_p3 }
  0x87   :  { %p490_p10 = pnand %p489_p5, %p483_p2 }
  0x89   :  { %493 = shalt.err (!%p490_p10)  }
  0x8a   :  { %108 = dma.hbm_to_vmem [thread:$0]  %s95_s28, 16, %s106_s17, [#allocation3 + $0x4] }
  0x8b   :  { %s111_s24 = scalar_select %p110_p8, %s697_s0, 0 }
  0x8c   :  { %s131_s25 = scalar_select %p130_p11, %s701_s18, 0 }
  0x8d   :  { %p770_p12 = scmp.lt.s32.totalorder %s697_s0, 4999  ;;  %p318_p13 = scmp.lt.s32.totalorder %s701_s18, 4999 }
  0x8e   :  { %s725_s6 = sld [smem:[#allocation5 + $0x7]]  ;;  %s591_s11 = smov [#allocation2 + $0x6]  }
  0x8f   :  { %s788_s24 = smov (!%p770_p12, %s111_s24), 4999  ;;  %s145_s13 = sshll.u32 %s591_s11, 4  ;;  %s146_s13 = int_to_ptr.vmem [resolvable:$true] %s145_s13 }
  0x90   :  { %s316_s5 = sshll.u32 %s788_s24, 4 }
  0x91   :  { %s115_s10 = scalar_lea.hbm %s768_s1, %s316_s5 }
  0x92   :  { %s494_s14 = scalar_lea.hbm %s115_s10, 16  ;;  %p497_p8 = scmp.lt.u32.totalorder %s115_s10, %s768_s1 }
  0x93   :  { %p495_p10 = scmp.ne.s32.totalorder %s115_s10, %s494_s14  ;;  %p498_p11 = scmp.lt.u32.totalorder %s637_s8, %s494_s14 }
  0x94   :  { %p500_p7 = scmp.lt.u32.totalorder %s494_s14, %s115_s10 }
  0x95   :  { %p499_p9 = por %p498_p11, %p497_p8 }
  0x97   :  { %p501_p0 = por %p500_p7, %p499_p9 }
  0x99   :  { %p502_p1 = pnand %p501_p0, %p495_p10 }
  0x9b   :  { %505 = shalt.err (!%p502_p1)  }
  0x9c   :  { %s506_s0 = scalar_lea.vmem %s126_s20, 16  ;;  %p511_p2 = scmp.lt.s32.totalorder %s126_s20, %s620_s21 }
  0x9d   :  { %p507_p6 = scmp.ne.s32.totalorder %s126_s20, %s506_s0  ;;  %p512_p3 = scmp.lt.s32.totalorder %s646_s12, %s506_s0 }
  0x9f   :  { %p513_p4 = por %p512_p3, %p511_p2 }
  0xa1   :  { %p514_p5 = pnand %p513_p4, %p507_p6 }
  0xa3   :  { %517 = shalt.err (!%p514_p5)  }
  0xa4   :  { %128 = dma.hbm_to_vmem [thread:$0]  %s115_s10, 16, %s126_s20, [#allocation3 + $0x5] }
  0xa5   :  { %s790_s25 = smov (!%p318_p13, %s131_s25), 4999  ;;  %p150_p12 = scmp.gt.s32.totalorder %s725_s6, 0 }
  0xa6   :  { %s323_s16 = sshll.u32 %s790_s25, 4 }
  0xa7   :  { %s135_s22 = scalar_lea.hbm %s768_s1, %s323_s16 }
  0xa8   :  { %s518_s23 = scalar_lea.hbm %s135_s22, 16  ;;  %p521_p8 = scmp.lt.u32.totalorder %s135_s22, %s768_s1 }
  0xa9   :  { %p519_p10 = scmp.ne.s32.totalorder %s135_s22, %s518_s23  ;;  %p522_p11 = scmp.lt.u32.totalorder %s637_s8, %s518_s23 }
  0xaa   :  { %p524_p7 = scmp.lt.u32.totalorder %s518_s23, %s135_s22 }
  0xab   :  { %p523_p9 = por %p522_p11, %p521_p8 }
  0xad   :  { %p525_p0 = por %p524_p7, %p523_p9 }
  0xaf   :  { %p526_p1 = pnand %p525_p0, %p519_p10 }
  0xb1   :  { %529 = shalt.err (!%p526_p1)  }
  0xb2   :  { %s530_s18 = scalar_lea.vmem %s146_s13, 16  ;;  %p535_p6 = scmp.lt.s32.totalorder %s146_s13, %s620_s21 }
  0xb3   :  { %p531_p13 = scmp.ne.s32.totalorder %s146_s13, %s530_s18  ;;  %p536_p2 = scmp.lt.s32.totalorder %s646_s12, %s530_s18 }
  0xb5   :  { %p537_p3 = por %p536_p2, %p535_p6 }
  0xb7   :  { %p538_p4 = pnand %p537_p3, %p531_p13 }
  0xb9   :  { %541 = shalt.err (!%p538_p4)  }
  0xba   :  { %148 = dma.hbm_to_vmem [thread:$0]  %s135_s22, 16, %s146_s13, [#allocation3 + $0x6] }
  0xbb   :  { %s151_s20 = scalar_select %p150_p12, %s725_s6, 0 }
  0xbc   :  { %p325_p5 = scmp.lt.s32.totalorder %s725_s6, 4999  ;;  %s592_s29 = smov [#allocation2 + $0x7]  }
  0xbd   :  { %s165_s30 = sshll.u32 %s592_s29, 4  ;;  %s166_s30 = int_to_ptr.vmem [resolvable:$true] %s165_s30 }
  0xbe   :  { %s792_s20 = smov (!%p325_p5, %s151_s20), 4999 }
  0xbf   :  { %s330_s3 = sshll.u32 %s792_s20, 4 }
  0xc0   :  { %s155_s25 = scalar_lea.hbm %s768_s1, %s330_s3 }
  0xc1   :  { %s542_s5 = scalar_lea.hbm %s155_s25, 16  ;;  %p545_p8 = scmp.lt.u32.totalorder %s155_s25, %s768_s1 }
  0xc2   :  { %p543_p10 = scmp.ne.s32.totalorder %s155_s25, %s542_s5  ;;  %p546_p11 = scmp.lt.u32.totalorder %s637_s8, %s542_s5 }
  0xc3   :  { %p548_p7 = scmp.lt.u32.totalorder %s542_s5, %s155_s25 }
  0xc4   :  { %p547_p9 = por %p546_p11, %p545_p8 }
  0xc6   :  { %p549_p12 = por %p548_p7, %p547_p9 }
  0xc8   :  { %p550_p0 = pnand %p549_p12, %p543_p10 }
  0xca   :  { %553 = shalt.err (!%p550_p0)  }
  0xcb   :  { %s554_s6 = scalar_lea.vmem %s166_s30, 16  ;;  %p559_p13 = scmp.lt.s32.totalorder %s166_s30, %s620_s21 }
  0xcc   :  { %p555_p1 = scmp.ne.s32.totalorder %s166_s30, %s554_s6  ;;  %p560_p6 = scmp.lt.s32.totalorder %s646_s12, %s554_s6 }
  0xce   :  { %p561_p2 = por %p560_p6, %p559_p13 }
  0xd0   :  { %p562_p3 = pnand %p561_p2, %p555_p1 }
  0xd2   :  { %565 = shalt.err (!%p562_p3)  }
  0xd3   :  { %168 = dma.hbm_to_vmem [thread:$0]  %s155_s25, 16, %s166_s30, [#allocation3 + $0x7] }
  0xd4   :  { %568 = dma.done.wait [#allocation3], 16 }
  0xd5   :  { %569 = vsyncadd [#allocation3], 4294967280 }
  0xd6   :  { %570 = dma.done.wait [#allocation3 + $0x1], 16 }
  0xd7   :  { %571 = vsyncadd [#allocation3 + $0x1], 4294967280 }
  0xd8   :  { %572 = dma.done.wait [#allocation3 + $0x2], 16 }
  0xd9   :  { %573 = vsyncadd [#allocation3 + $0x2], 4294967280 }
  0xda   :  { %574 = dma.done.wait [#allocation3 + $0x3], 16 }
  0xdb   :  { %575 = vsyncadd [#allocation3 + $0x3], 4294967280 }
  0xdc   :  { %576 = dma.done.wait [#allocation3 + $0x4], 16 }
  0xdd   :  { %577 = vsyncadd [#allocation3 + $0x4], 4294967280 }
  0xde   :  { %578 = dma.done.wait [#allocation3 + $0x5], 16 }
  0xdf   :  { %579 = vsyncadd [#allocation3 + $0x5], 4294967280 }
  0xe0   :  { %580 = dma.done.wait [#allocation3 + $0x6], 16 }
  0xe1   :  { %581 = vsyncadd [#allocation3 + $0x6], 4294967280 }
  0xe2   :  { %582 = dma.done.wait [#allocation3 + $0x7], 16 }
  0xe3   :  { %583 = vsyncadd [#allocation3 + $0x7], 4294967280  ;;  %v186_v0 = vld [vmem:[#allocation2] sm:$0xff]  ;;  %vm195_vm0 = vcmask 1040384   ;;  %vm196_vm1 = vsmask.f32 256 }
  0xe4   :  { %v187_v1 = vrot.slane %v186_v0, 4  ;;  %vm197_vm2 = vmand %vm195_vm0, %vm196_vm1  ;;  %v198_v8 = vld [vmem:[%s769_s2] sm:$0x1] }
  0xe6   :  { %v188_v2 = vadd.f32 %v187_v1, %v186_v0 }
  0xe8   :  { %v189_v3 = vrot.slane %v188_v2, 2 }
  0xea   :  { %v190_v4 = vadd.f32 %v189_v3, %v188_v2 }
  0xec   :  { %v191_v5 = vrot.slane %v190_v4, 1 }
  0xee   :  { %v192_v6 = vadd.f32 %v191_v5, %v190_v4 }
  0xf0   :  { %v193_v7 = vmul.f32 0.125, %v192_v6 }
  0xf2   :  { %v194_v9 = vpack.c.bf16 %v193_v7, %v193_v7 }
  0xf4   :  { %v199_v10 = vsel %vm197_vm2, %v194_v9, %v198_v8 }
  0xf5   :  { %200 = vst [vmem:[%s769_s2] sm:$0x1] %v199_v10 }
  0xf6   :  { %205 = vsyncmov [#allocation3] }
  0xf9   :  { %s206_s10 = vpop.sfrf %205 }
  0xfa   :  { %p331_p4 = scmp.ne.s32.totalorder %s206_s10, 0 }
  0xfc   :  { %210 = shalt.err (%p331_p4)  }
  0xfd   :  { %212 = vsyncmov [#allocation3 + $0x1] }
 0x100   :  { %s213_s11 = vpop.sfrf %212 }
 0x101   :  { %p332_p5 = scmp.ne.s32.totalorder %s213_s11, 0 }
 0x103   :  { %217 = shalt.err (%p332_p5)  }
 0x104   :  { %219 = vsyncmov [#allocation3 + $0x2] }
 0x107   :  { %s220_s13 = vpop.sfrf %219 }
 0x108   :  { %p333_p10 = scmp.ne.s32.totalorder %s220_s13, 0 }
 0x10a   :  { %224 = shalt.err (%p333_p10)  }
 0x10b   :  { %226 = vsyncmov [#allocation3 + $0x3] }
 0x10e   :  { %s227_s14 = vpop.sfrf %226 }
 0x10f   :  { %p334_p8 = scmp.ne.s32.totalorder %s227_s14, 0 }
 0x111   :  { %231 = shalt.err (%p334_p8)  }
 0x112   :  { %233 = vsyncmov [#allocation3 + $0x4] }
 0x115   :  { %s234_s15 = vpop.sfrf %233 }
 0x116   :  { %p335_p11 = scmp.ne.s32.totalorder %s234_s15, 0 }
 0x118   :  { %238 = shalt.err (%p335_p11)  }
 0x119   :  { %240 = vsyncmov [#allocation3 + $0x5] }
 0x11c   :  { %s241_s2 = vpop.sfrf %240 }
 0x11d   :  { %p336_p9 = scmp.ne.s32.totalorder %s241_s2, 0 }
 0x11f   :  { %245 = shalt.err (%p336_p9)  }
 0x120   :  { %247 = vsyncmov [#allocation3 + $0x6] }
 0x123   :  { %s248_s27 = vpop.sfrf %247 }
 0x124   :  { %p337_p7 = scmp.ne.s32.totalorder %s248_s27, 0 }
 0x126   :  { %252 = shalt.err (%p337_p7)  }
 0x127   :  { %254 = vsyncmov [#allocation3 + $0x7] }
 0x12a   :  { %s255_s0 = vpop.sfrf %254 }
 0x12b   :  { %p338_p12 = scmp.ne.s32.totalorder %s255_s0, 0 }
 0x12d   :  { %259 = shalt.err (%p338_p12)  }

// kernel: cbow_forward.5
= control target key start
LH: loop header
LB: loop body
LE: loop exit
PB: predicated region body
PF: predicated region fallthrough
CT: control target
= control target key end

     0   :  { %s176_s1 = inlined_call_operand.vmem [shape: f32[24,128], index: 1, kind: input, shape index: {}]   ;;  %s177_s2 = inlined_call_operand.vmem [shape: f32[24,128], index: 2, kind: input, shape index: {}]   ;;  %s178_s0 = inlined_call_operand.vmem [shape: f32[1,6144], index: 0, kind: input, shape index: {}]   ;;  %s179_s3 = inlined_call_operand.vmem [shape: f32[1,6144], index: 3, kind: output, shape index: {}]  }
   0x1   :  { %v14_v0 = vld [vmem:[%s176_s1] sm:$0xff]  ;;  %v15_v1 = vld [vmem:[%s176_s1 + $0x8] sm:$0xff]  ;;  %v16_v2 = vld [vmem:[%s176_s1 + $0x10] sm:$0xff] }
   0x2   :  { %v20_v3 = vmax.f32 %v14_v0, %v15_v1  ;;  %v17_v19 = vld [vmem:[%s177_s2] sm:$0xff]  ;;  %v18_v20 = vld [vmem:[%s177_s2 + $0x8] sm:$0xff]  ;;  %v19_v23 = vld [vmem:[%s177_s2 + $0x10] sm:$0xff] }
   0x3   :  { %v61_v40 = vld [vmem:[%s178_s0] sm:$0xff]  ;;  %v62_v41 = vld [vmem:[%s178_s0 + $0x8] sm:$0xff]  ;;  %v63_v42 = vld [vmem:[%s178_s0 + $0x10] sm:$0xff] }
   0x4   :  { %v21_v4 = vmax.f32 %v20_v3, %v16_v2  ;;  %v64_v43 = vld [vmem:[%s178_s0 + $0x18] sm:$0xff]  ;;  %v65_v44 = vld [vmem:[%s178_s0 + $0x20] sm:$0xff]  ;;  %v66_v45 = vld [vmem:[%s178_s0 + $0x28] sm:$0xff] }
   0x6   :  { %22 = vmax.xlane.f32.xlu0 %v21_v4 }
  0x93   :  { %v23_v5 = vpop.xlane.xlu0 %22 }
  0x94   :  { %v24_v6 = vrot.slane %v23_v5, 4 }
  0x96   :  { %v25_v7 = vmax.f32 %v23_v5, %v24_v6 }
  0x98   :  { %v26_v8 = vrot.slane %v25_v7, 2 }
  0x9a   :  { %v27_v9 = vmax.f32 %v25_v7, %v26_v8 }
  0x9c   :  { %v28_v10 = vrot.slane %v27_v9, 1 }
  0x9e   :  { %v29_v11 = vmax.f32 %v27_v9, %v28_v10 }
  0xa0   :  { %84 = vpush %v29_v11 }
  0xd1   :  { %s127_s18 = spop %84 }
  0xd2   :  { %v31_v12 = vstv %s127_s18 }
  0xd3   :  { %v32_v13 = vsub.f32 %v14_v0, %v31_v12  ;;  %v33_v14 = vsub.f32 %v15_v1, %v31_v12  ;;  %v34_v15 = vsub.f32 %v16_v2, %v31_v12 }
  0xd5   :  { %v35_v16 = vmul.f32 1.442695, %v32_v13  ;;  %v37_v17 = vmul.f32 1.442695, %v33_v14  ;;  %v39_v18 = vmul.f32 1.442695, %v34_v15 }
  0xd7   :  { %90 = vpow2.f32 %v35_v16 }
  0xd8   :  { %92 = vpow2.f32 %v37_v17 }
  0xd9   :  { %94 = vpow2.f32 %v39_v18 }
  0xe1   :  { %v91_v21 = vpop.eup %90 }
  0xe2   :  { %v93_v22 = vpop.eup %92  ;;  %v41_v24 = vmul.f32 %v91_v21, %v17_v19 }
  0xe3   :  { %v95_v25 = vpop.eup %94  ;;  %v42_v26 = vmul.f32 %v93_v22, %v18_v20 }
  0xe4   :  { %v43_v27 = vmul.f32 %v95_v25, %v19_v23 }
  0xe5   :  { %v44_v28 = vadd.f32 %v42_v26, %v41_v24 }
  0xe7   :  { %v45_v29 = vadd.f32 %v44_v28, %v43_v27 }
  0xe9   :  { %46 = vadd.xlane.f32.xlu0 %v45_v29 }
 0x176   :  { %v47_v30 = vpop.xlane.xlu0 %46 }
 0x177   :  { %v48_v31 = vrot.slane %v47_v30, 4 }
 0x179   :  { %v49_v32 = vadd.f32 %v48_v31, %v47_v30 }
 0x17b   :  { %v50_v33 = vrot.slane %v49_v32, 2 }
 0x17d   :  { %v51_v34 = vadd.f32 %v50_v33, %v49_v32 }
 0x17f   :  { %v52_v35 = vrot.slane %v51_v34, 1 }
 0x181   :  { %v53_v36 = vadd.f32 %v52_v35, %v51_v34 }
 0x183   :  { %86 = vpush %v53_v36 }
 0x1b4   :  { %s87_s24 = spop %86 }
 0x1b5   :  { %s55_s25 = smul.f32 0.0009765625, %s87_s24 }
 0x1b7   :  { %v56_v37 = vstv %s55_s25 }
 0x1b8   :  { %96 = vlog2.f32 %v56_v37 }
 0x1c2   :  { %v97_v38 = vpop.eup %96 }
 0x1c3   :  { %v58_v39 = vmul.f32 0.6931472, %v97_v38 }
 0x1c5   :  { %88 = vpush %v58_v39 }
 0x1f6   :  { %s89_s2 = spop %88 }
 0x1f7   :  { %s60_s28 = sadd.f32 %s89_s2, %s127_s18 }
 0x1f9   :  { %v67_v46 = vstv %s60_s28 }
 0x1fa   :  { %v68_v47 = vsub.f32 %v61_v40, %v67_v46  ;;  %v69_v48 = vsub.f32 %v62_v41, %v67_v46  ;;  %v70_v49 = vsub.f32 %v63_v42, %v67_v46  ;;  %v71_v50 = vsub.f32 %v64_v43, %v67_v46 }
 0x1fb   :  { %v72_v51 = vsub.f32 %v65_v44, %v67_v46  ;;  %v73_v52 = vsub.f32 %v66_v45, %v67_v46 }
 0x1fc   :  { %74 = vst [vmem:[%s179_s3] sm:$0xff] %v68_v47  ;;  %75 = vst [vmem:[%s179_s3 + $0x8] sm:$0xff] %v69_v48 }
 0x1fd   :  { %76 = vst [vmem:[%s179_s3 + $0x10] sm:$0xff] %v70_v49  ;;  %77 = vst [vmem:[%s179_s3 + $0x18] sm:$0xff] %v71_v50 }
 0x1fe   :  { %78 = vst [vmem:[%s179_s3 + $0x20] sm:$0xff] %v72_v51  ;;  %79 = vst [vmem:[%s179_s3 + $0x28] sm:$0xff] %v73_v52 }

// kernel: cbow_forward.4
= control target key start
LH: loop header
LB: loop body
LE: loop exit
PB: predicated region body
PF: predicated region fallthrough
CT: control target
= control target key end

     0   :  { %s2361_s18 = smov 0   ;;  %s2363_s19 = smov 0   ;;  %s3011_s0 = inlined_call_operand.vmem [shape: bf16[1,128], index: 0, kind: input, shape index: {}]   ;;  %s3012_s1 = inlined_call_operand.vmem [shape: bf16[128,6144], index: 1, kind: input, shape index: {}]   ;;  %s3013_s2 = inlined_call_operand.vmem [shape: f32[1,6144], index: 2, kind: input, shape index: {}]   ;;  %s3014_s3 = inlined_call_operand.vmem [shape: f32[1,6144], index: 3, kind: output, shape index: {0}]   ;;  %s3015_s4 = inlined_call_operand.vmem [shape: f32[24,128], index: 4, kind: output, shape index: {1}]   ;;  %s3016_s5 = inlined_call_operand.vmem [shape: f32[24,128], index: 5, kind: output, shape index: {2}]  }
   0x1   :  { %s2365_s20 = smov 0  }
   0x2 LB: > { %s2377_s21 = sadd.s32 4294967295, %s2327_s20   ;;  %s2380_s22 = sadd.s32 1, %s2327_s20   ;;  %s2327_s20 = sphi %s2365_s20, %s3019_s20   ;;  %s2323_s19 = sphi %s2363_s19, %s3018_s19   ;;  %s2319_s18 = sphi %s2361_s18, %s3017_s18  }
   0x3   : > { %s41_s23 = ssub.s32 %s2327_s20, %s2380_s22  ;;  %s44_s24 = sadd.s32 1, %s2323_s19 }
   0x4   : > { %p42_p0 = scmp.eq.s32.totalorder %s41_s23, 0  ;;  %p51_p1 = scmp.ne.s32.totalorder %s2323_s19, %s2319_s18 }
   0x5   : > { %p52_p2 = scmp.eq.s32.totalorder %s2327_s20, 0  ;;  %p2102_p4 = scmp.ge.s32.totalorder %s2327_s20, 3 }
   0x6   : > { %s2389_s25 = scalar_select %p42_p0, %s2323_s19, %s44_s24  }
   0x7   : > { %p53_p3 = por %p52_p2, %p51_p1  ;;  %184 = sbr.rel (%p2102_p4) target bundleno = 82 (0x52), region = 20 }
   0xe   : > { %187 = sbr.rel (!%p53_p3) target bundleno = 82 (0x52), region = 24  ;;  %s189_s26 = sand.u32 (%p53_p3), 1, %s2323_s19  }
   0xf   : > { %s2242_s27 = sshll.u32 (%p53_p3), %s2327_s20, 6  ;;  %s2103_s28 = sshll.u32 (%p53_p3), %s189_s26, 10 }
  0x10   : > { %s2397_s6 = scalar_lea.vmem (%p53_p3), %s3012_s1, %s2242_s27  ;;  %s2402_s7 = scalar_lea.vmem (%p53_p3), [#allocation2], %s2103_s28 }
  0x11   : > { %v207_v0 = vld [vmem:[%s2397_s6] sm:$0xff] (%p53_p3)  ;;  %v209_v1 = vld [vmem:[%s2397_s6 + $0x8] sm:$0xff] (%p53_p3)  ;;  %v211_v2 = vld [vmem:[%s2397_s6 + $0x10] sm:$0xff] (%p53_p3) }
  0x12   : > { %208 = vst [vmem:[%s2402_s7] sm:$0xff] (%p53_p3), %v207_v0  ;;  %210 = vst [vmem:[%s2402_s7 + $0x8] sm:$0xff] (%p53_p3), %v209_v1  ;;  %v213_v3 = vld [vmem:[%s2397_s6 + $0x18] sm:$0xff] (%p53_p3)  ;;  %v215_v4 = vld [vmem:[%s2397_s6 + $0x20] sm:$0xff] (%p53_p3) }
  0x13   : > { %212 = vst [vmem:[%s2402_s7 + $0x10] sm:$0xff] (%p53_p3), %v211_v2  ;;  %v217_v5 = vld [vmem:[%s2397_s6 + $0x28] sm:$0xff] (%p53_p3)  ;;  %214 = vst [vmem:[%s2402_s7 + $0x18] sm:$0xff] (%p53_p3), %v213_v3  ;;  %v219_v6 = vld [vmem:[%s2397_s6 + $0x30] sm:$0xff] (%p53_p3) }
  0x14   : > { %216 = vst [vmem:[%s2402_s7 + $0x20] sm:$0xff] (%p53_p3), %v215_v4  ;;  %218 = vst [vmem:[%s2402_s7 + $0x28] sm:$0xff] (%p53_p3), %v217_v5  ;;  %v221_v7 = vld [vmem:[%s2397_s6 + $0x38] sm:$0xff] (%p53_p3)  ;;  %v223_v8 = vld [vmem:[%s2397_s6 + $0xc0] sm:$0xff] (%p53_p3) }
  0x15   : > { %220 = vst [vmem:[%s2402_s7 + $0x30] sm:$0xff] %v219_v6  ;;  %222 = vst [vmem:[%s2402_s7 + $0x38] sm:$0xff] %v221_v7  ;;  %v225_v9 = vld [vmem:[%s2397_s6 + $0xc8] sm:$0xff]  ;;  %v227_v10 = vld [vmem:[%s2397_s6 + $0xd0] sm:$0xff] }
  0x16   : > { %224 = vst [vmem:[%s2402_s7 + $0x40] sm:$0xff] %v223_v8  ;;  %v229_v11 = vld [vmem:[%s2397_s6 + $0xd8] sm:$0xff]  ;;  %226 = vst [vmem:[%s2402_s7 + $0x48] sm:$0xff] %v225_v9  ;;  %v231_v12 = vld [vmem:[%s2397_s6 + $0xe0] sm:$0xff] }
  0x17   : > { %228 = vst [vmem:[%s2402_s7 + $0x50] sm:$0xff] %v227_v10  ;;  %230 = vst [vmem:[%s2402_s7 + $0x58] sm:$0xff] %v229_v11  ;;  %v233_v13 = vld [vmem:[%s2397_s6 + $0xe8] sm:$0xff]  ;;  %v235_v14 = vld [vmem:[%s2397_s6 + $0xf0] sm:$0xff] }
  0x18   : > { %232 = vst [vmem:[%s2402_s7 + $0x60] sm:$0xff] %v231_v12  ;;  %234 = vst [vmem:[%s2402_s7 + $0x68] sm:$0xff] %v233_v13  ;;  %v237_v15 = vld [vmem:[%s2397_s6 + $0xf8] sm:$0xff]  ;;  %v239_v16 = vld [vmem:[%s2397_s6 + $0x180] sm:$0xff] }
  0x19   : > { %236 = vst [vmem:[%s2402_s7 + $0x70] sm:$0xff] %v235_v14  ;;  %v241_v17 = vld [vmem:[%s2397_s6 + $0x188] sm:$0xff]  ;;  %238 = vst [vmem:[%s2402_s7 + $0x78] sm:$0xff] %v237_v15  ;;  %v243_v18 = vld [vmem:[%s2397_s6 + $0x190] sm:$0xff] }
  0x1a   : > { %240 = vst [vmem:[%s2402_s7 + $0x80] sm:$0xff] %v239_v16  ;;  %242 = vst [vmem:[%s2402_s7 + $0x88] sm:$0xff] %v241_v17  ;;  %v245_v19 = vld [vmem:[%s2397_s6 + $0x198] sm:$0xff]  ;;  %v247_v20 = vld [vmem:[%s2397_s6 + $0x1a0] sm:$0xff] }
  0x1b   : > { %244 = vst [vmem:[%s2402_s7 + $0x90] sm:$0xff] %v243_v18  ;;  %246 = vst [vmem:[%s2402_s7 + $0x98] sm:$0xff] %v245_v19  ;;  %v249_v21 = vld [vmem:[%s2397_s6 + $0x1a8] sm:$0xff]  ;;  %v251_v22 = vld [vmem:[%s2397_s6 + $0x1b0] sm:$0xff] }
  0x1c   : > { %248 = vst [vmem:[%s2402_s7 + $0xa0] sm:$0xff] %v247_v20  ;;  %v253_v23 = vld [vmem:[%s2397_s6 + $0x1b8] sm:$0xff]  ;;  %250 = vst [vmem:[%s2402_s7 + $0xa8] sm:$0xff] %v249_v21  ;;  %v255_v24 = vld [vmem:[%s2397_s6 + $0x240] sm:$0xff] }
  0x1d   : > { %252 = vst [vmem:[%s2402_s7 + $0xb0] sm:$0xff] %v251_v22  ;;  %254 = vst [vmem:[%s2402_s7 + $0xb8] sm:$0xff] %v253_v23  ;;  %v257_v25 = vld [vmem:[%s2397_s6 + $0x248] sm:$0xff]  ;;  %v259_v26 = vld [vmem:[%s2397_s6 + $0x250] sm:$0xff] }
  0x1e   : > { %256 = vst [vmem:[%s2402_s7 + $0xc0] sm:$0xff] %v255_v24  ;;  %258 = vst [vmem:[%s2402_s7 + $0xc8] sm:$0xff] %v257_v25  ;;  %v261_v27 = vld [vmem:[%s2397_s6 + $0x258] sm:$0xff]  ;;  %v263_v28 = vld [vmem:[%s2397_s6 + $0x260] sm:$0xff] }
  0x1f   : > { %260 = vst [vmem:[%s2402_s7 + $0xd0] sm:$0xff] %v259_v26  ;;  %v265_v29 = vld [vmem:[%s2397_s6 + $0x268] sm:$0xff]  ;;  %262 = vst [vmem:[%s2402_s7 + $0xd8] sm:$0xff] %v261_v27  ;;  %v267_v30 = vld [vmem:[%s2397_s6 + $0x270] sm:$0xff] }
  0x20   : > { %264 = vst [vmem:[%s2402_s7 + $0xe0] sm:$0xff] %v263_v28  ;;  %266 = vst [vmem:[%s2402_s7 + $0xe8] sm:$0xff] %v265_v29  ;;  %v269_v31 = vld [vmem:[%s2397_s6 + $0x278] sm:$0xff]  ;;  %v271_v32 = vld [vmem:[%s2397_s6 + $0x300] sm:$0xff] }
  0x21   : > { %268 = vst [vmem:[%s2402_s7 + $0xf0] sm:$0xff] %v267_v30  ;;  %270 = vst [vmem:[%s2402_s7 + $0xf8] sm:$0xff] %v269_v31  ;;  %v273_v33 = vld [vmem:[%s2397_s6 + $0x308] sm:$0xff]  ;;  %v275_v34 = vld [vmem:[%s2397_s6 + $0x310] sm:$0xff] }
  0x22   : > { %272 = vst [vmem:[%s2402_s7 + $0x100] sm:$0xff] %v271_v32  ;;  %v277_v35 = vld [vmem:[%s2397_s6 + $0x318] sm:$0xff]  ;;  %274 = vst [vmem:[%s2402_s7 + $0x108] sm:$0xff] %v273_v33  ;;  %v279_v36 = vld [vmem:[%s2397_s6 + $0x320] sm:$0xff] }
  0x23   : > { %276 = vst [vmem:[%s2402_s7 + $0x110] sm:$0xff] %v275_v34  ;;  %278 = vst [vmem:[%s2402_s7 + $0x118] sm:$0xff] %v277_v35  ;;  %v281_v37 = vld [vmem:[%s2397_s6 + $0x328] sm:$0xff]  ;;  %v283_v38 = vld [vmem:[%s2397_s6 + $0x330] sm:$0xff] }
  0x24   : > { %280 = vst [vmem:[%s2402_s7 + $0x120] sm:$0xff] %v279_v36  ;;  %282 = vst [vmem:[%s2402_s7 + $0x128] sm:$0xff] %v281_v37  ;;  %v285_v39 = vld [vmem:[%s2397_s6 + $0x338] sm:$0xff]  ;;  %v287_v40 = vld [vmem:[%s2397_s6 + $0x3c0] sm:$0xff] }
  0x25   : > { %284 = vst [vmem:[%s2402_s7 + $0x130] sm:$0xff] %v283_v38  ;;  %v289_v41 = vld [vmem:[%s2397_s6 + $0x3c8] sm:$0xff]  ;;  %286 = vst [vmem:[%s2402_s7 + $0x138] sm:$0xff] %v285_v39  ;;  %v291_v42 = vld [vmem:[%s2397_s6 + $0x3d0] sm:$0xff] }
  0x26   : > { %288 = vst [vmem:[%s2402_s7 + $0x140] sm:$0xff] %v287_v40  ;;  %290 = vst [vmem:[%s2402_s7 + $0x148] sm:$0xff] %v289_v41  ;;  %v293_v43 = vld [vmem:[%s2397_s6 + $0x3d8] sm:$0xff]  ;;  %v295_v44 = vld [vmem:[%s2397_s6 + $0x3e0] sm:$0xff] }
  0x27   : > { %292 = vst [vmem:[%s2402_s7 + $0x150] sm:$0xff] %v291_v42  ;;  %294 = vst [vmem:[%s2402_s7 + $0x158] sm:$0xff] %v293_v43  ;;  %v297_v45 = vld [vmem:[%s2397_s6 + $0x3e8] sm:$0xff]  ;;  %v299_v46 = vld [vmem:[%s2397_s6 + $0x3f0] sm:$0xff] }
  0x28   : > { %296 = vst [vmem:[%s2402_s7 + $0x160] sm:$0xff] %v295_v44  ;;  %v301_v47 = vld [vmem:[%s2397_s6 + $0x3f8] sm:$0xff]  ;;  %298 = vst [vmem:[%s2402_s7 + $0x168] sm:$0xff] %v297_v45  ;;  %v303_v48 = vld [vmem:[%s2397_s6 + $0x480] sm:$0xff] }
  0x29   : > { %300 = vst [vmem:[%s2402_s7 + $0x170] sm:$0xff] %v299_v46  ;;  %302 = vst [vmem:[%s2402_s7 + $0x178] sm:$0xff] %v301_v47  ;;  %v305_v49 = vld [vmem:[%s2397_s6 + $0x488] sm:$0xff]  ;;  %v307_v50 = vld [vmem:[%s2397_s6 + $0x490] sm:$0xff] }
  0x2a   : > { %304 = vst [vmem:[%s2402_s7 + $0x180] sm:$0xff] %v303_v48  ;;  %306 = vst [vmem:[%s2402_s7 + $0x188] sm:$0xff] %v305_v49  ;;  %v309_v51 = vld [vmem:[%s2397_s6 + $0x498] sm:$0xff]  ;;  %v311_v52 = vld [vmem:[%s2397_s6 + $0x4a0] sm:$0xff] }
  0x2b   : > { %308 = vst [vmem:[%s2402_s7 + $0x190] sm:$0xff] %v307_v50  ;;  %v313_v53 = vld [vmem:[%s2397_s6 + $0x4a8] sm:$0xff]  ;;  %310 = vst [vmem:[%s2402_s7 + $0x198] sm:$0xff] %v309_v51  ;;  %v315_v54 = vld [vmem:[%s2397_s6 + $0x4b0] sm:$0xff] }
  0x2c   : > { %312 = vst [vmem:[%s2402_s7 + $0x1a0] sm:$0xff] %v311_v52  ;;  %314 = vst [vmem:[%s2402_s7 + $0x1a8] sm:$0xff] %v313_v53  ;;  %v317_v55 = vld [vmem:[%s2397_s6 + $0x4b8] sm:$0xff]  ;;  %v319_v56 = vld [vmem:[%s2397_s6 + $0x540] sm:$0xff] }
  0x2d   : > { %316 = vst [vmem:[%s2402_s7 + $0x1b0] sm:$0xff] %v315_v54  ;;  %318 = vst [vmem:[%s2402_s7 + $0x1b8] sm:$0xff] %v317_v55  ;;  %v321_v57 = vld [vmem:[%s2397_s6 + $0x548] sm:$0xff]  ;;  %v323_v58 = vld [vmem:[%s2397_s6 + $0x550] sm:$0xff] }
  0x2e   : > { %320 = vst [vmem:[%s2402_s7 + $0x1c0] sm:$0xff] %v319_v56  ;;  %v325_v59 = vld [vmem:[%s2397_s6 + $0x558] sm:$0xff]  ;;  %322 = vst [vmem:[%s2402_s7 + $0x1c8] sm:$0xff] %v321_v57  ;;  %v327_v60 = vld [vmem:[%s2397_s6 + $0x560] sm:$0xff] }
  0x2f   : > { %324 = vst [vmem:[%s2402_s7 + $0x1d0] sm:$0xff] %v323_v58  ;;  %326 = vst [vmem:[%s2402_s7 + $0x1d8] sm:$0xff] %v325_v59  ;;  %v329_v61 = vld [vmem:[%s2397_s6 + $0x568] sm:$0xff]  ;;  %v331_v62 = vld [vmem:[%s2397_s6 + $0x570] sm:$0xff] }
  0x30   : > { %328 = vst [vmem:[%s2402_s7 + $0x1e0] sm:$0xff] %v327_v60  ;;  %330 = vst [vmem:[%s2402_s7 + $0x1e8] sm:$0xff] %v329_v61  ;;  %v333_v63 = vld [vmem:[%s2397_s6 + $0x578] sm:$0xff]  ;;  %v335_v0 = vld [vmem:[%s2397_s6 + $0x600] sm:$0xff] }
  0x31   : > { %332 = vst [vmem:[%s2402_s7 + $0x1f0] sm:$0xff] %v331_v62  ;;  %v337_v1 = vld [vmem:[%s2397_s6 + $0x608] sm:$0xff]  ;;  %334 = vst [vmem:[%s2402_s7 + $0x1f8] sm:$0xff] %v333_v63  ;;  %v339_v2 = vld [vmem:[%s2397_s6 + $0x610] sm:$0xff] }
  0x32   : > { %336 = vst [vmem:[%s2402_s7 + $0x200] sm:$0xff] %v335_v0  ;;  %338 = vst [vmem:[%s2402_s7 + $0x208] sm:$0xff] %v337_v1  ;;  %v341_v3 = vld [vmem:[%s2397_s6 + $0x618] sm:$0xff]  ;;  %v343_v4 = vld [vmem:[%s2397_s6 + $0x620] sm:$0xff] }
  0x33   : > { %340 = vst [vmem:[%s2402_s7 + $0x210] sm:$0xff] %v339_v2  ;;  %342 = vst [vmem:[%s2402_s7 + $0x218] sm:$0xff] %v341_v3  ;;  %v345_v5 = vld [vmem:[%s2397_s6 + $0x628] sm:$0xff]  ;;  %v347_v6 = vld [vmem:[%s2397_s6 + $0x630] sm:$0xff] }
  0x34   : > { %344 = vst [vmem:[%s2402_s7 + $0x220] sm:$0xff] %v343_v4  ;;  %v349_v7 = vld [vmem:[%s2397_s6 + $0x638] sm:$0xff]  ;;  %346 = vst [vmem:[%s2402_s7 + $0x228] sm:$0xff] %v345_v5  ;;  %v351_v8 = vld [vmem:[%s2397_s6 + $0x6c0] sm:$0xff] }
  0x35   : > { %348 = vst [vmem:[%s2402_s7 + $0x230] sm:$0xff] %v347_v6  ;;  %350 = vst [vmem:[%s2402_s7 + $0x238] sm:$0xff] %v349_v7  ;;  %v353_v9 = vld [vmem:[%s2397_s6 + $0x6c8] sm:$0xff]  ;;  %v355_v10 = vld [vmem:[%s2397_s6 + $0x6d0] sm:$0xff] }
  0x36   : > { %352 = vst [vmem:[%s2402_s7 + $0x240] sm:$0xff] %v351_v8  ;;  %354 = vst [vmem:[%s2402_s7 + $0x248] sm:$0xff] %v353_v9  ;;  %v357_v11 = vld [vmem:[%s2397_s6 + $0x6d8] sm:$0xff]  ;;  %v359_v12 = vld [vmem:[%s2397_s6 + $0x6e0] sm:$0xff] }
  0x37   : > { %356 = vst [vmem:[%s2402_s7 + $0x250] sm:$0xff] %v355_v10  ;;  %v361_v13 = vld [vmem:[%s2397_s6 + $0x6e8] sm:$0xff]  ;;  %358 = vst [vmem:[%s2402_s7 + $0x258] sm:$0xff] %v357_v11  ;;  %v363_v14 = vld [vmem:[%s2397_s6 + $0x6f0] sm:$0xff] }
  0x38   : > { %360 = vst [vmem:[%s2402_s7 + $0x260] sm:$0xff] %v359_v12  ;;  %362 = vst [vmem:[%s2402_s7 + $0x268] sm:$0xff] %v361_v13  ;;  %v365_v15 = vld [vmem:[%s2397_s6 + $0x6f8] sm:$0xff]  ;;  %v367_v16 = vld [vmem:[%s2397_s6 + $0x780] sm:$0xff] }
  0x39   : > { %364 = vst [vmem:[%s2402_s7 + $0x270] sm:$0xff] %v363_v14  ;;  %366 = vst [vmem:[%s2402_s7 + $0x278] sm:$0xff] %v365_v15  ;;  %v369_v17 = vld [vmem:[%s2397_s6 + $0x788] sm:$0xff]  ;;  %v371_v18 = vld [vmem:[%s2397_s6 + $0x790] sm:$0xff] }
  0x3a   : > { %368 = vst [vmem:[%s2402_s7 + $0x280] sm:$0xff] %v367_v16  ;;  %v373_v19 = vld [vmem:[%s2397_s6 + $0x798] sm:$0xff]  ;;  %370 = vst [vmem:[%s2402_s7 + $0x288] sm:$0xff] %v369_v17  ;;  %v375_v20 = vld [vmem:[%s2397_s6 + $0x7a0] sm:$0xff] }
  0x3b   : > { %372 = vst [vmem:[%s2402_s7 + $0x290] sm:$0xff] %v371_v18  ;;  %374 = vst [vmem:[%s2402_s7 + $0x298] sm:$0xff] %v373_v19  ;;  %v377_v21 = vld [vmem:[%s2397_s6 + $0x7a8] sm:$0xff]  ;;  %v379_v22 = vld [vmem:[%s2397_s6 + $0x7b0] sm:$0xff] }
  0x3c   : > { %376 = vst [vmem:[%s2402_s7 + $0x2a0] sm:$0xff] %v375_v20  ;;  %378 = vst [vmem:[%s2402_s7 + $0x2a8] sm:$0xff] %v377_v21  ;;  %v381_v23 = vld [vmem:[%s2397_s6 + $0x7b8] sm:$0xff]  ;;  %v383_v24 = vld [vmem:[%s2397_s6 + $0x840] sm:$0xff] }
  0x3d   : > { %380 = vst [vmem:[%s2402_s7 + $0x2b0] sm:$0xff] %v379_v22  ;;  %v385_v25 = vld [vmem:[%s2397_s6 + $0x848] sm:$0xff]  ;;  %382 = vst [vmem:[%s2402_s7 + $0x2b8] sm:$0xff] %v381_v23  ;;  %v387_v26 = vld [vmem:[%s2397_s6 + $0x850] sm:$0xff] }
  0x3e   : > { %384 = vst [vmem:[%s2402_s7 + $0x2c0] sm:$0xff] %v383_v24  ;;  %386 = vst [vmem:[%s2402_s7 + $0x2c8] sm:$0xff] %v385_v25  ;;  %v389_v27 = vld [vmem:[%s2397_s6 + $0x858] sm:$0xff]  ;;  %v391_v28 = vld [vmem:[%s2397_s6 + $0x860] sm:$0xff] }
  0x3f   : > { %388 = vst [vmem:[%s2402_s7 + $0x2d0] sm:$0xff] %v387_v26  ;;  %390 = vst [vmem:[%s2402_s7 + $0x2d8] sm:$0xff] %v389_v27  ;;  %v393_v29 = vld [vmem:[%s2397_s6 + $0x868] sm:$0xff]  ;;  %v395_v30 = vld [vmem:[%s2397_s6 + $0x870] sm:$0xff] }
  0x40   : > { %392 = vst [vmem:[%s2402_s7 + $0x2e0] sm:$0xff] %v391_v28  ;;  %v397_v31 = vld [vmem:[%s2397_s6 + $0x878] sm:$0xff]  ;;  %394 = vst [vmem:[%s2402_s7 + $0x2e8] sm:$0xff] %v393_v29  ;;  %v399_v32 = vld [vmem:[%s2397_s6 + $0x900] sm:$0xff] }
  0x41   : > { %396 = vst [vmem:[%s2402_s7 + $0x2f0] sm:$0xff] %v395_v30  ;;  %398 = vst [vmem:[%s2402_s7 + $0x2f8] sm:$0xff] %v397_v31  ;;  %v401_v33 = vld [vmem:[%s2397_s6 + $0x908] sm:$0xff]  ;;  %v403_v34 = vld [vmem:[%s2397_s6 + $0x910] sm:$0xff] }
  0x42   : > { %400 = vst [vmem:[%s2402_s7 + $0x300] sm:$0xff] %v399_v32  ;;  %402 = vst [vmem:[%s2402_s7 + $0x308] sm:$0xff] %v401_v33  ;;  %v405_v35 = vld [vmem:[%s2397_s6 + $0x918] sm:$0xff]  ;;  %v407_v36 = vld [vmem:[%s2397_s6 + $0x920] sm:$0xff] }
  0x43   : > { %404 = vst [vmem:[%s2402_s7 + $0x310] sm:$0xff] %v403_v34  ;;  %v409_v37 = vld [vmem:[%s2397_s6 + $0x928] sm:$0xff]  ;;  %406 = vst [vmem:[%s2402_s7 + $0x318] sm:$0xff] %v405_v35  ;;  %v411_v38 = vld [vmem:[%s2397_s6 + $0x930] sm:$0xff] }
  0x44   : > { %408 = vst [vmem:[%s2402_s7 + $0x320] sm:$0xff] %v407_v36  ;;  %410 = vst [vmem:[%s2402_s7 + $0x328] sm:$0xff] %v409_v37  ;;  %v413_v39 = vld [vmem:[%s2397_s6 + $0x938] sm:$0xff]  ;;  %v415_v40 = vld [vmem:[%s2397_s6 + $0x9c0] sm:$0xff] }
  0x45   : > { %412 = vst [vmem:[%s2402_s7 + $0x330] sm:$0xff] %v411_v38  ;;  %414 = vst [vmem:[%s2402_s7 + $0x338] sm:$0xff] %v413_v39  ;;  %v417_v41 = vld [vmem:[%s2397_s6 + $0x9c8] sm:$0xff]  ;;  %v419_v42 = vld [vmem:[%s2397_s6 + $0x9d0] sm:$0xff] }
  0x46   : > { %416 = vst [vmem:[%s2402_s7 + $0x340] sm:$0xff] %v415_v40  ;;  %v421_v43 = vld [vmem:[%s2397_s6 + $0x9d8] sm:$0xff]  ;;  %418 = vst [vmem:[%s2402_s7 + $0x348] sm:$0xff] %v417_v41  ;;  %v423_v44 = vld [vmem:[%s2397_s6 + $0x9e0] sm:$0xff] }
  0x47   : > { %420 = vst [vmem:[%s2402_s7 + $0x350] sm:$0xff] %v419_v42  ;;  %422 = vst [vmem:[%s2402_s7 + $0x358] sm:$0xff] %v421_v43  ;;  %v425_v45 = vld [vmem:[%s2397_s6 + $0x9e8] sm:$0xff]  ;;  %v427_v46 = vld [vmem:[%s2397_s6 + $0x9f0] sm:$0xff] }
  0x48   : > { %424 = vst [vmem:[%s2402_s7 + $0x360] sm:$0xff] %v423_v44  ;;  %426 = vst [vmem:[%s2402_s7 + $0x368] sm:$0xff] %v425_v45  ;;  %v429_v47 = vld [vmem:[%s2397_s6 + $0x9f8] sm:$0xff]  ;;  %v431_v48 = vld [vmem:[%s2397_s6 + $0xa80] sm:$0xff] }
  0x49   : > { %428 = vst [vmem:[%s2402_s7 + $0x370] sm:$0xff] %v427_v46  ;;  %v433_v49 = vld [vmem:[%s2397_s6 + $0xa88] sm:$0xff]  ;;  %430 = vst [vmem:[%s2402_s7 + $0x378] sm:$0xff] %v429_v47  ;;  %v435_v50 = vld [vmem:[%s2397_s6 + $0xa90] sm:$0xff] }
  0x4a   : > { %432 = vst [vmem:[%s2402_s7 + $0x380] sm:$0xff] %v431_v48  ;;  %434 = vst [vmem:[%s2402_s7 + $0x388] sm:$0xff] %v433_v49  ;;  %v437_v51 = vld [vmem:[%s2397_s6 + $0xa98] sm:$0xff]  ;;  %v439_v52 = vld [vmem:[%s2397_s6 + $0xaa0] sm:$0xff] }
  0x4b   : > { %436 = vst [vmem:[%s2402_s7 + $0x390] sm:$0xff] %v435_v50  ;;  %438 = vst [vmem:[%s2402_s7 + $0x398] sm:$0xff] %v437_v51  ;;  %v441_v53 = vld [vmem:[%s2397_s6 + $0xaa8] sm:$0xff]  ;;  %v443_v54 = vld [vmem:[%s2397_s6 + $0xab0] sm:$0xff] }
  0x4c   : > { %440 = vst [vmem:[%s2402_s7 + $0x3a0] sm:$0xff] %v439_v52  ;;  %v445_v55 = vld [vmem:[%s2397_s6 + $0xab8] sm:$0xff]  ;;  %442 = vst [vmem:[%s2402_s7 + $0x3a8] sm:$0xff] %v441_v53  ;;  %v447_v56 = vld [vmem:[%s2397_s6 + $0xb40] sm:$0xff] }
  0x4d   : > { %444 = vst [vmem:[%s2402_s7 + $0x3b0] sm:$0xff] %v443_v54  ;;  %446 = vst [vmem:[%s2402_s7 + $0x3b8] sm:$0xff] %v445_v55  ;;  %v449_v57 = vld [vmem:[%s2397_s6 + $0xb48] sm:$0xff]  ;;  %v451_v58 = vld [vmem:[%s2397_s6 + $0xb50] sm:$0xff] }
  0x4e   : > { %448 = vst [vmem:[%s2402_s7 + $0x3c0] sm:$0xff] %v447_v56  ;;  %450 = vst [vmem:[%s2402_s7 + $0x3c8] sm:$0xff] %v449_v57  ;;  %v453_v59 = vld [vmem:[%s2397_s6 + $0xb58] sm:$0xff]  ;;  %v455_v60 = vld [vmem:[%s2397_s6 + $0xb60] sm:$0xff] }
  0x4f   : > { %452 = vst [vmem:[%s2402_s7 + $0x3d0] sm:$0xff] %v451_v58  ;;  %v457_v61 = vld [vmem:[%s2397_s6 + $0xb68] sm:$0xff]  ;;  %454 = vst [vmem:[%s2402_s7 + $0x3d8] sm:$0xff] %v453_v59  ;;  %v459_v62 = vld [vmem:[%s2397_s6 + $0xb70] sm:$0xff] }
  0x50   : > { %456 = vst [vmem:[%s2402_s7 + $0x3e0] sm:$0xff] %v455_v60  ;;  %458 = vst [vmem:[%s2402_s7 + $0x3e8] sm:$0xff] %v457_v61  ;;  %v461_v63 = vld [vmem:[%s2397_s6 + $0xb78] sm:$0xff] }
  0x51   : > { %460 = vst [vmem:[%s2402_s7 + $0x3f0] sm:$0xff] %v459_v62  ;;  %462 = vst [vmem:[%s2402_s7 + $0x3f8] sm:$0xff] %v461_v63 }
  0x52 PF: > { %p2106_p5 = scmp.ge.s32.totalorder %s2327_s20, 1  ;;  %p475_p6 = scmp.lt.s32.totalorder %s2327_s20, 4 }
  0x54   : > { %p476_p7 = pnand %p2106_p5, %p475_p6 }
  0x55   : > { %s482_s8 = sand.u32 (!%p476_p7), 1, %s2319_s18   ;;  %v2329_v0 = vmov (!%p476_p7), 0   ;;  %s2108_s13 = sshll.u32 (!%p476_p7), %s2377_s21, 4  ;;  %vm1839_vm0 = vcmask (!%p476_p7), 1040384  }
  0x56   : > { %479 = sbr.rel (%p476_p7) target bundleno = 901 (0x385), region = 51  ;;  %s2107_s9 = sshll.u32 (!%p476_p7), %s482_s8, 10  ;;  %1425 = vmatprep.mubr.bf16.mxu0 (!%p476_p7), %v2329_v0  ;;  %1466 = vmatprep.mubr.bf16.mxu1 (!%p476_p7), %v2329_v0 }
  0x57   : > { %s2662_s10 = scalar_lea.vmem (!%p476_p7), [#allocation2], %s2107_s9  ;;  %p522_p8 = scmp.lt.s32.totalorder (!%p476_p7), %s2108_s13, 47 }
  0x58   : > { %v541_v1 = vld [vmem:[%s2662_s10] sm:$0xff] (!%p476_p7)  ;;  %v542_v3 = vld [vmem:[%s2662_s10 + $0x8] sm:$0xff] (!%p476_p7)  ;;  %v543_v63 = vld [vmem:[%s2662_s10 + $0x10] sm:$0xff] (!%p476_p7)  ;;  %p531_p9 = scmp.lt.s32.totalorder (!%p476_p7), %s2377_s21, 2 }
  0x59   : > { %v549_v2 = vld [vmem:[%s2662_s10 + $0x40] sm:$0xff] (!%p476_p7)  ;;  %v550_v5 = vld [vmem:[%s2662_s10 + $0x48] sm:$0xff] (!%p476_p7) }
  0x5a   : > { %v2113_v4 = vcombine.high (!%p476_p7), %v541_v1, %v549_v2  ;;  %v2112_v6 = vcombine.low (!%p476_p7), %v541_v1, %v549_v2  ;;  %v557_v7 = vld [vmem:[%s2662_s10 + $0x80] sm:$0xff] (!%p476_p7)  ;;  %v2115_v9 = vcombine.high (!%p476_p7), %v542_v3, %v550_v5  ;;  %v2114_v10 = vcombine.low (!%p476_p7), %v542_v3, %v550_v5  ;;  %v558_v12 = vld [vmem:[%s2662_s10 + $0x88] sm:$0xff] (!%p476_p7)  ;;  %v551_v1 = vld [vmem:[%s2662_s10 + $0x50] sm:$0xff] (!%p476_p7) }
  0x5b   : > { %v565_v8 = vld [vmem:[%s2662_s10 + $0xc0] sm:$0xff] (!%p476_p7)  ;;  %v566_v13 = vld [vmem:[%s2662_s10 + $0xc8] sm:$0xff] (!%p476_p7)  ;;  %v544_v2 = vld [vmem:[%s2662_s10 + $0x18] sm:$0xff] (!%p476_p7) }
  0x5c   : > { %v2129_v11 = vcombine.high (!%p476_p7), %v557_v7, %v565_v8  ;;  %v573_v14 = vld [vmem:[%s2662_s10 + $0x100] sm:$0xff] (!%p476_p7)  ;;  %1393 = vmatprep.subr.bf16.mxu0 (!%p476_p7), %v2113_v4  ;;  %v2131_v15 = vcombine.high (!%p476_p7), %v558_v12, %v566_v13  ;;  %v574_v17 = vld [vmem:[%s2662_s10 + $0x108] sm:$0xff] (!%p476_p7)  ;;  %1434 = vmatprep.subr.bf16.mxu1 (!%p476_p7), %v2115_v9  ;;  %v2128_v19 = vcombine.low (!%p476_p7), %v557_v7, %v565_v8  ;;  %v552_v3 = vld [vmem:[%s2662_s10 + $0x58] sm:$0xff] (!%p476_p7) }
  0x5d   : > { %v581_v16 = vld [vmem:[%s2662_s10 + $0x140] sm:$0xff]  ;;  %v582_v18 = vld [vmem:[%s2662_s10 + $0x148] sm:$0xff]  ;;  %1394 = vmatpush1.bf16.msra.mxu0 %v2112_v6  ;;  %1435 = vmatpush1.bf16.msra.mxu1 %v2114_v10  ;;  %v2130_v20 = vcombine.low %v558_v12, %v566_v13  ;;  %v2117_v6 = vcombine.high %v543_v63, %v551_v1  ;;  %v2119_v7 = vcombine.high %v544_v2, %v552_v3  ;;  %v559_v8 = vld [vmem:[%s2662_s10 + $0x90] sm:$0xff]  ;;  %s3021_s13 = smov (!%p522_p8, %s2108_s13), 47  ;;  %s3023_s21 = smov (!%p531_p9, %s2377_s21), 2 }
  0x5e   : > { %1395 = vmatprep.subr.bf16.mxu0 %v2129_v11  ;;  %v2145_v21 = vcombine.high %v573_v14, %v581_v16  ;;  %1436 = vmatprep.subr.bf16.mxu1 %v2131_v15  ;;  %v2147_v22 = vcombine.high %v574_v17, %v582_v18  ;;  %v589_v23 = vld [vmem:[%s2662_s10 + $0x180] sm:$0xff]  ;;  %v590_v25 = vld [vmem:[%s2662_s10 + $0x188] sm:$0xff]  ;;  %v2144_v27 = vcombine.low %v573_v14, %v581_v16  ;;  %v567_v9 = vld [vmem:[%s2662_s10 + $0xd0] sm:$0xff]  ;;  %s2820_s16 = scalar_lea.vmem %s3013_s2, %s3021_s13  ;;  %s2868_s20 = scalar_lea.vmem %s3014_s3, %s3021_s13 }
  0x5f   : > { %v597_v24 = vld [vmem:[%s2662_s10 + $0x1c0] sm:$0xff]  ;;  %v598_v26 = vld [vmem:[%s2662_s10 + $0x1c8] sm:$0xff]  ;;  %v2146_v28 = vcombine.low %v574_v17, %v582_v18  ;;  %v560_v10 = vld [vmem:[%s2662_s10 + $0x98] sm:$0xff]  ;;  %v2116_v13 = vcombine.low %v543_v63, %v551_v1  ;;  %v2118_v14 = vcombine.low %v544_v2, %v552_v3  ;;  %v2133_v15 = vcombine.high %v559_v8, %v567_v9  ;;  %s2110_s23 = sshll.u32 %s3023_s21, 3 }
  0x60   : > { %v2161_v29 = vcombine.high %v589_v23, %v597_v24  ;;  %v2163_v30 = vcombine.high %v590_v25, %v598_v26  ;;  %v605_v31 = vld [vmem:[%s2662_s10 + $0x200] sm:$0xff]  ;;  %v606_v33 = vld [vmem:[%s2662_s10 + $0x208] sm:$0xff]  ;;  %v2160_v35 = vcombine.low %v589_v23, %v597_v24  ;;  %v2162_v36 = vcombine.low %v590_v25, %v598_v26  ;;  %v568_v11 = vld [vmem:[%s2662_s10 + $0xd8] sm:$0xff]  ;;  %s534_s27 = scalar_lea.vmem %s3015_s4, %s2110_s23  ;;  %s538_s6 = scalar_lea.vmem %s3016_s5, %s2110_s23 }
  0x61   : > { %1396 = vmatpush1.bf16.msra.mxu0 %v2128_v19  ;;  %1437 = vmatpush1.bf16.msra.mxu1 %v2130_v20  ;;  %v613_v32 = vld [vmem:[%s2662_s10 + $0x240] sm:$0xff]  ;;  %v614_v34 = vld [vmem:[%s2662_s10 + $0x248] sm:$0xff]  ;;  %v2135_v16 = vcombine.high %v560_v10, %v568_v11  ;;  %v575_v17 = vld [vmem:[%s2662_s10 + $0x110] sm:$0xff] }
  0x62   : > { %1397 = vmatprep.subr.bf16.mxu0 %v2145_v21  ;;  %1438 = vmatprep.subr.bf16.mxu1 %v2147_v22  ;;  %v2177_v37 = vcombine.high %v605_v31, %v613_v32  ;;  %v2179_v38 = vcombine.high %v606_v33, %v614_v34  ;;  %v621_v39 = vld [vmem:[%s2662_s10 + $0x280] sm:$0xff]  ;;  %v622_v41 = vld [vmem:[%s2662_s10 + $0x288] sm:$0xff]  ;;  %v2176_v43 = vcombine.low %v605_v31, %v613_v32  ;;  %v583_v18 = vld [vmem:[%s2662_s10 + $0x150] sm:$0xff] }
  0x63   : > { %v629_v40 = vld [vmem:[%s2662_s10 + $0x2c0] sm:$0xff]  ;;  %v630_v42 = vld [vmem:[%s2662_s10 + $0x2c8] sm:$0xff]  ;;  %v2178_v44 = vcombine.low %v606_v33, %v614_v34  ;;  %v576_v19 = vld [vmem:[%s2662_s10 + $0x118] sm:$0xff]  ;;  %v2132_v21 = vcombine.low %v559_v8, %v567_v9  ;;  %v2134_v22 = vcombine.low %v560_v10, %v568_v11  ;;  %v2149_v23 = vcombine.high %v575_v17, %v583_v18 }
  0x64   : > { %v2193_v45 = vcombine.high %v621_v39, %v629_v40  ;;  %v2195_v46 = vcombine.high %v622_v41, %v630_v42  ;;  %v637_v47 = vld [vmem:[%s2662_s10 + $0x300] sm:$0xff]  ;;  %v638_v49 = vld [vmem:[%s2662_s10 + $0x308] sm:$0xff]  ;;  %v2192_v51 = vcombine.low %v621_v39, %v629_v40  ;;  %v2194_v52 = vcombine.low %v622_v41, %v630_v42  ;;  %v584_v20 = vld [vmem:[%s2662_s10 + $0x158] sm:$0xff] }
  0x65   : > { %1398 = vmatpush1.bf16.msra.mxu0 %v2144_v27  ;;  %1439 = vmatpush1.bf16.msra.mxu1 %v2146_v28  ;;  %v645_v48 = vld [vmem:[%s2662_s10 + $0x340] sm:$0xff]  ;;  %v646_v50 = vld [vmem:[%s2662_s10 + $0x348] sm:$0xff]  ;;  %v2151_v24 = vcombine.high %v576_v19, %v584_v20  ;;  %v591_v25 = vld [vmem:[%s2662_s10 + $0x190] sm:$0xff] }
  0x66   : > { %1399 = vmatprep.subr.bf16.mxu0 %v2161_v29  ;;  %1440 = vmatprep.subr.bf16.mxu1 %v2163_v30  ;;  %v2209_v53 = vcombine.high %v637_v47, %v645_v48  ;;  %v2211_v54 = vcombine.high %v638_v49, %v646_v50  ;;  %v653_v55 = vld [vmem:[%s2662_s10 + $0x380] sm:$0xff]  ;;  %v654_v57 = vld [vmem:[%s2662_s10 + $0x388] sm:$0xff]  ;;  %v2208_v59 = vcombine.low %v637_v47, %v645_v48  ;;  %v599_v26 = vld [vmem:[%s2662_s10 + $0x1d0] sm:$0xff] }
  0x67   : > { %v661_v56 = vld [vmem:[%s2662_s10 + $0x3c0] sm:$0xff]  ;;  %v662_v58 = vld [vmem:[%s2662_s10 + $0x3c8] sm:$0xff]  ;;  %v2210_v60 = vcombine.low %v638_v49, %v646_v50  ;;  %v592_v27 = vld [vmem:[%s2662_s10 + $0x198] sm:$0xff]  ;;  %v2148_v29 = vcombine.low %v575_v17, %v583_v18  ;;  %v2150_v30 = vcombine.low %v576_v19, %v584_v20  ;;  %v2165_v31 = vcombine.high %v591_v25, %v599_v26 }
  0x68   : > { %v2225_v61 = vcombine.high %v653_v55, %v661_v56  ;;  %v2227_v62 = vcombine.high %v654_v57, %v662_v58  ;;  %v2224_v4 = vcombine.low %v653_v55, %v661_v56  ;;  %v2226_v5 = vcombine.low %v654_v57, %v662_v58  ;;  %v2707_v12 = vld [vmem:[%s3011_s0] sm:$0x1]  ;;  %v600_v28 = vld [vmem:[%s2662_s10 + $0x1d8] sm:$0xff]  ;;  %v607_v33 = vld [vmem:[%s2662_s10 + $0x210] sm:$0xff] }
  0x69   : > { %1400 = vmatpush1.bf16.msra.mxu0 %v2160_v35  ;;  %1441 = vmatpush1.bf16.msra.mxu1 %v2162_v36  ;;  %v2167_v32 = vcombine.high %v592_v27, %v600_v28  ;;  %v615_v34 = vld [vmem:[%s2662_s10 + $0x250] sm:$0xff]  ;;  %v608_v35 = vld [vmem:[%s2662_s10 + $0x218] sm:$0xff]  ;;  %v545_v2 = vld [vmem:[%s2662_s10 + $0x20] sm:$0xff] }
  0x6a   : > { %1401 = vmatprep.subr.bf16.mxu0 %v2177_v37  ;;  %1442 = vmatprep.subr.bf16.mxu1 %v2179_v38  ;;  %v616_v36 = vld [vmem:[%s2662_s10 + $0x258] sm:$0xff]  ;;  %v2164_v37 = vcombine.low %v591_v25, %v599_v26  ;;  %v2166_v38 = vcombine.low %v592_v27, %v600_v28  ;;  %v2181_v39 = vcombine.high %v607_v33, %v615_v34  ;;  %v623_v41 = vld [vmem:[%s2662_s10 + $0x290] sm:$0xff]  ;;  %v553_v3 = vld [vmem:[%s2662_s10 + $0x60] sm:$0xff] }
  0x6b   : > { %v2183_v40 = vcombine.high %v608_v35, %v616_v36  ;;  %v631_v42 = vld [vmem:[%s2662_s10 + $0x2d0] sm:$0xff]  ;;  %v2121_v8 = vcombine.high %v545_v2, %v553_v3  ;;  %v561_v10 = vld [vmem:[%s2662_s10 + $0xa0] sm:$0xff] }
  0x6c   : > { %v2197_v47 = vcombine.high %v623_v41, %v631_v42  ;;  %v639_v49 = vld [vmem:[%s2662_s10 + $0x310] sm:$0xff]  ;;  %v569_v11 = vld [vmem:[%s2662_s10 + $0xe0] sm:$0xff] }
  0x6d   : > { %1402 = vmatpush1.bf16.msra.mxu0 %v2176_v43  ;;  %1443 = vmatpush1.bf16.msra.mxu1 %v2178_v44  ;;  %v624_v43 = vld [vmem:[%s2662_s10 + $0x298] sm:$0xff]  ;;  %v647_v50 = vld [vmem:[%s2662_s10 + $0x350] sm:$0xff]  ;;  %v2137_v17 = vcombine.high %v561_v10, %v569_v11  ;;  %v577_v19 = vld [vmem:[%s2662_s10 + $0x120] sm:$0xff] }
  0x6e   : > { %1403 = vmatprep.subr.bf16.mxu0 %v2193_v45  ;;  %1444 = vmatprep.subr.bf16.mxu1 %v2195_v46  ;;  %v632_v44 = vld [vmem:[%s2662_s10 + $0x2d8] sm:$0xff]  ;;  %v2180_v45 = vcombine.low %v607_v33, %v615_v34  ;;  %v2182_v46 = vcombine.low %v608_v35, %v616_v36  ;;  %v2213_v55 = vcombine.high %v639_v49, %v647_v50  ;;  %v655_v57 = vld [vmem:[%s2662_s10 + $0x390] sm:$0xff]  ;;  %v585_v20 = vld [vmem:[%s2662_s10 + $0x160] sm:$0xff] }
  0x6f   : > { %v2199_v48 = vcombine.high %v624_v43, %v632_v44  ;;  %v663_v58 = vld [vmem:[%s2662_s10 + $0x3d0] sm:$0xff]  ;;  %v2153_v25 = vcombine.high %v577_v19, %v585_v20  ;;  %v593_v27 = vld [vmem:[%s2662_s10 + $0x1a0] sm:$0xff] }
  0x70   : > { %v2229_v63 = vcombine.high %v655_v57, %v663_v58  ;;  %v601_v28 = vld [vmem:[%s2662_s10 + $0x1e0] sm:$0xff] }
  0x71   : > { %1404 = vmatpush1.bf16.msra.mxu0 %v2192_v51  ;;  %1445 = vmatpush1.bf16.msra.mxu1 %v2194_v52  ;;  %v640_v51 = vld [vmem:[%s2662_s10 + $0x318] sm:$0xff]  ;;  %v2169_v33 = vcombine.high %v593_v27, %v601_v28  ;;  %v609_v35 = vld [vmem:[%s2662_s10 + $0x220] sm:$0xff] }
  0x72   : > { %1405 = vmatprep.subr.bf16.mxu0 %v2209_v53  ;;  %1446 = vmatprep.subr.bf16.mxu1 %v2211_v54  ;;  %v648_v52 = vld [vmem:[%s2662_s10 + $0x358] sm:$0xff]  ;;  %v2196_v53 = vcombine.low %v623_v41, %v631_v42  ;;  %v2198_v54 = vcombine.low %v624_v43, %v632_v44  ;;  %v617_v36 = vld [vmem:[%s2662_s10 + $0x260] sm:$0xff] }
  0x73   : > { %v2215_v56 = vcombine.high %v640_v51, %v648_v52  ;;  %v2185_v41 = vcombine.high %v609_v35, %v617_v36  ;;  %v625_v43 = vld [vmem:[%s2662_s10 + $0x2a0] sm:$0xff] }
  0x74   : > { %v633_v44 = vld [vmem:[%s2662_s10 + $0x2e0] sm:$0xff] }
  0x75   : > { %1406 = vmatpush1.bf16.msra.mxu0 %v2208_v59  ;;  %1447 = vmatpush1.bf16.msra.mxu1 %v2210_v60  ;;  %v656_v59 = vld [vmem:[%s2662_s10 + $0x398] sm:$0xff] }
  0x76   : > { %1407 = vmatprep.subr.bf16.mxu0 %v2225_v61  ;;  %1448 = vmatprep.subr.bf16.mxu1 %v2227_v62  ;;  %v664_v60 = vld [vmem:[%s2662_s10 + $0x3d8] sm:$0xff]  ;;  %v2212_v61 = vcombine.low %v639_v49, %v647_v50  ;;  %v2214_v62 = vcombine.low %v640_v51, %v648_v52  ;;  %v2201_v49 = vcombine.high %v625_v43, %v633_v44  ;;  %v641_v51 = vld [vmem:[%s2662_s10 + $0x320] sm:$0xff] }
  0x77   : > { %v2231_v1 = vcombine.high %v656_v59, %v664_v60  ;;  %v649_v52 = vld [vmem:[%s2662_s10 + $0x360] sm:$0xff] }
  0x79   : > { %1408 = vmatpush1.bf16.msra.mxu0 %v2224_v4  ;;  %1449 = vmatpush1.bf16.msra.mxu1 %v2226_v5  ;;  %v546_v4 = vld [vmem:[%s2662_s10 + $0x28] sm:$0xff] }
  0x7a   : > { %1475 = vmatprep.subr.bf16.mxu0 %v2117_v6  ;;  %1516 = vmatprep.subr.bf16.mxu1 %v2119_v7  ;;  %v554_v5 = vld [vmem:[%s2662_s10 + $0x68] sm:$0xff]  ;;  %v2228_v6 = vcombine.low %v655_v57, %v663_v58  ;;  %v2230_v7 = vcombine.low %v656_v59, %v664_v60  ;;  %v2217_v57 = vcombine.high %v641_v51, %v649_v52  ;;  %v657_v59 = vld [vmem:[%s2662_s10 + $0x3a0] sm:$0xff] }
  0x7b   : > { %v2123_v9 = vcombine.high %v546_v4, %v554_v5  ;;  %v665_v60 = vld [vmem:[%s2662_s10 + $0x3e0] sm:$0xff] }
  0x7c   : > { %1426 = vmatmul.mubr.bf16.vlgmr.msra.gmra.mrb[0].mxu0 %v2707_v12  ;;  %1467 = vmatmul.mubr.bf16.vlgmr.msra.gmra.mrb[0].mxu1 %v2707_v12 }
  0x7d   : > { %1476 = vmatpush1.bf16.msra.mxu0 %v2116_v13  ;;  %1517 = vmatpush1.bf16.msra.mxu1 %v2118_v14  ;;  %v562_v13 = vld [vmem:[%s2662_s10 + $0xa8] sm:$0xff] }
  0x7e   : > { %1477 = vmatprep.subr.bf16.mxu0 %v2133_v15  ;;  %1518 = vmatprep.subr.bf16.mxu1 %v2135_v16  ;;  %v570_v14 = vld [vmem:[%s2662_s10 + $0xe8] sm:$0xff]  ;;  %v2120_v15 = vcombine.low %v545_v2, %v553_v3  ;;  %v2122_v16 = vcombine.low %v546_v4, %v554_v5  ;;  %v2233_v2 = vcombine.high %v657_v59, %v665_v60  ;;  %v547_v4 = vld [vmem:[%s2662_s10 + $0x30] sm:$0xff] }
  0x7f   : > { %1507 = vmatprep.mubr.bf16.mxu0 %v2329_v0  ;;  %1548 = vmatprep.mubr.bf16.mxu1 %v2329_v0  ;;  %v2139_v18 = vcombine.high %v562_v13, %v570_v14  ;;  %v555_v5 = vld [vmem:[%s2662_s10 + $0x70] sm:$0xff] }
  0x81   : > { %1478 = vmatpush1.bf16.msra.mxu0 %v2132_v21  ;;  %1519 = vmatpush1.bf16.msra.mxu1 %v2134_v22  ;;  %v578_v21 = vld [vmem:[%s2662_s10 + $0x128] sm:$0xff] }
  0x82   : > { %1479 = vmatprep.subr.bf16.mxu0 %v2149_v23  ;;  %1520 = vmatprep.subr.bf16.mxu1 %v2151_v24  ;;  %v586_v22 = vld [vmem:[%s2662_s10 + $0x168] sm:$0xff]  ;;  %v2136_v23 = vcombine.low %v561_v10, %v569_v11  ;;  %v2138_v24 = vcombine.low %v562_v13, %v570_v14  ;;  %v2125_v10 = vcombine.high %v547_v4, %v555_v5  ;;  %v563_v13 = vld [vmem:[%s2662_s10 + $0xb0] sm:$0xff] }
  0x83   : > { %v2155_v26 = vcombine.high %v578_v21, %v586_v22  ;;  %v571_v14 = vld [vmem:[%s2662_s10 + $0xf0] sm:$0xff] }
  0x85   : > { %1480 = vmatpush1.bf16.msra.mxu0 %v2148_v29  ;;  %1521 = vmatpush1.bf16.msra.mxu1 %v2150_v30  ;;  %v594_v29 = vld [vmem:[%s2662_s10 + $0x1a8] sm:$0xff] }
  0x86   : > { %1481 = vmatprep.subr.bf16.mxu0 %v2165_v31  ;;  %1522 = vmatprep.subr.bf16.mxu1 %v2167_v32  ;;  %v602_v30 = vld [vmem:[%s2662_s10 + $0x1e8] sm:$0xff]  ;;  %v2152_v31 = vcombine.low %v577_v19, %v585_v20  ;;  %v2154_v32 = vcombine.low %v578_v21, %v586_v22  ;;  %v2141_v19 = vcombine.high %v563_v13, %v571_v14  ;;  %v579_v21 = vld [vmem:[%s2662_s10 + $0x130] sm:$0xff] }
  0x87   : > { %v2171_v34 = vcombine.high %v594_v29, %v602_v30  ;;  %v587_v22 = vld [vmem:[%s2662_s10 + $0x170] sm:$0xff] }
  0x89   : > { %1482 = vmatpush1.bf16.msra.mxu0 %v2164_v37  ;;  %1523 = vmatpush1.bf16.msra.mxu1 %v2166_v38  ;;  %v610_v37 = vld [vmem:[%s2662_s10 + $0x228] sm:$0xff] }
  0x8a   : > { %1483 = vmatprep.subr.bf16.mxu0 %v2181_v39  ;;  %1524 = vmatprep.subr.bf16.mxu1 %v2183_v40  ;;  %v618_v38 = vld [vmem:[%s2662_s10 + $0x268] sm:$0xff]  ;;  %v2168_v39 = vcombine.low %v593_v27, %v601_v28  ;;  %v2170_v40 = vcombine.low %v594_v29, %v602_v30  ;;  %v2157_v27 = vcombine.high %v579_v21, %v587_v22  ;;  %v595_v29 = vld [vmem:[%s2662_s10 + $0x1b0] sm:$0xff] }
  0x8b   : > { %v2187_v42 = vcombine.high %v610_v37, %v618_v38  ;;  %v603_v30 = vld [vmem:[%s2662_s10 + $0x1f0] sm:$0xff] }
  0x8d   : > { %1484 = vmatpush1.bf16.msra.mxu0 %v2180_v45  ;;  %1525 = vmatpush1.bf16.msra.mxu1 %v2182_v46  ;;  %v626_v45 = vld [vmem:[%s2662_s10 + $0x2a8] sm:$0xff] }
  0x8e   : > { %1485 = vmatprep.subr.bf16.mxu0 %v2197_v47  ;;  %1526 = vmatprep.subr.bf16.mxu1 %v2199_v48  ;;  %v634_v46 = vld [vmem:[%s2662_s10 + $0x2e8] sm:$0xff]  ;;  %v2184_v47 = vcombine.low %v609_v35, %v617_v36  ;;  %v2186_v48 = vcombine.low %v610_v37, %v618_v38  ;;  %v2173_v35 = vcombine.high %v595_v29, %v603_v30  ;;  %v611_v37 = vld [vmem:[%s2662_s10 + $0x230] sm:$0xff] }
  0x8f   : > { %v2203_v50 = vcombine.high %v626_v45, %v634_v46  ;;  %v619_v38 = vld [vmem:[%s2662_s10 + $0x270] sm:$0xff] }
  0x91   : > { %1486 = vmatpush1.bf16.msra.mxu0 %v2196_v53  ;;  %1527 = vmatpush1.bf16.msra.mxu1 %v2198_v54  ;;  %v642_v53 = vld [vmem:[%s2662_s10 + $0x328] sm:$0xff] }
  0x92   : > { %1487 = vmatprep.subr.bf16.mxu0 %v2213_v55  ;;  %1528 = vmatprep.subr.bf16.mxu1 %v2215_v56  ;;  %v650_v54 = vld [vmem:[%s2662_s10 + $0x368] sm:$0xff]  ;;  %v2200_v55 = vcombine.low %v625_v43, %v633_v44  ;;  %v2202_v56 = vcombine.low %v626_v45, %v634_v46  ;;  %v627_v44 = vld [vmem:[%s2662_s10 + $0x2b0] sm:$0xff]  ;;  %v628_v46 = vld [vmem:[%s2662_s10 + $0x2b8] sm:$0xff] }
  0x93   : > { %v2219_v58 = vcombine.high %v642_v53, %v650_v54  ;;  %v635_v45 = vld [vmem:[%s2662_s10 + $0x2f0] sm:$0xff] }
  0x95   : > { %1488 = vmatpush1.bf16.msra.mxu0 %v2212_v61  ;;  %1529 = vmatpush1.bf16.msra.mxu1 %v2214_v62  ;;  %v658_v61 = vld [vmem:[%s2662_s10 + $0x3a8] sm:$0xff] }
  0x96   : > { %1489 = vmatprep.subr.bf16.mxu0 %v2229_v63  ;;  %1530 = vmatprep.subr.bf16.mxu1 %v2231_v1  ;;  %v666_v62 = vld [vmem:[%s2662_s10 + $0x3e8] sm:$0xff]  ;;  %v2216_v63 = vcombine.low %v641_v51, %v649_v52  ;;  %v2218_v1 = vcombine.low %v642_v53, %v650_v54  ;;  %v643_v52 = vld [vmem:[%s2662_s10 + $0x330] sm:$0xff]  ;;  %v644_v54 = vld [vmem:[%s2662_s10 + $0x338] sm:$0xff] }
  0x97   : > { %v2235_v3 = vcombine.high %v658_v61, %v666_v62  ;;  %v651_v53 = vld [vmem:[%s2662_s10 + $0x370] sm:$0xff] }
  0x99   : > { %1490 = vmatpush1.bf16.msra.mxu0 %v2228_v6  ;;  %1531 = vmatpush1.bf16.msra.mxu1 %v2230_v7  ;;  %v548_v6 = vld [vmem:[%s2662_s10 + $0x38] sm:$0xff] }
  0x9a   : > { %1557 = vmatprep.subr.bf16.mxu0 %v2121_v8  ;;  %1598 = vmatprep.subr.bf16.mxu1 %v2123_v9  ;;  %v556_v7 = vld [vmem:[%s2662_s10 + $0x78] sm:$0xff]  ;;  %v2232_v8 = vcombine.low %v657_v59, %v665_v60  ;;  %v2234_v9 = vcombine.low %v658_v61, %v666_v62  ;;  %v659_v60 = vld [vmem:[%s2662_s10 + $0x3b0] sm:$0xff] }
  0x9b   : > { %v2127_v11 = vcombine.high %v548_v6, %v556_v7  ;;  %v667_v61 = vld [vmem:[%s2662_s10 + $0x3f0] sm:$0xff]  ;;  %v660_v62 = vld [vmem:[%s2662_s10 + $0x3b8] sm:$0xff] }
  0x9c   : > { %1508 = vmatmul.mubr.bf16.vlgmr.msra.gmra.mrb[4].mxu0 %v2707_v12  ;;  %1549 = vmatmul.mubr.bf16.vlgmr.msra.gmra.mrb[4].mxu1 %v2707_v12 }
  0x9d   : > { %1558 = vmatpush1.bf16.msra.mxu0 %v2120_v15  ;;  %1599 = vmatpush1.bf16.msra.mxu1 %v2122_v16  ;;  %v564_v15 = vld [vmem:[%s2662_s10 + $0xb8] sm:$0xff] }
  0x9e   : > { %1559 = vmatprep.subr.bf16.mxu0 %v2137_v17  ;;  %1600 = vmatprep.subr.bf16.mxu1 %v2139_v18  ;;  %v572_v16 = vld [vmem:[%s2662_s10 + $0xf8] sm:$0xff]  ;;  %v2124_v17 = vcombine.low %v547_v4, %v555_v5  ;;  %v2126_v18 = vcombine.low %v548_v6, %v556_v7  ;;  %v2236_v5 = vcombine.low %v659_v60, %v667_v61 }
  0x9f   : > { %1589 = vmatprep.mubr.bf16.mxu0 %v2329_v0  ;;  %1630 = vmatprep.mubr.bf16.mxu1 %v2329_v0  ;;  %v2143_v20 = vcombine.high %v564_v15, %v572_v16 }
  0xa1   : > { %1560 = vmatpush1.bf16.msra.mxu0 %v2136_v23  ;;  %1601 = vmatpush1.bf16.msra.mxu1 %v2138_v24  ;;  %v580_v23 = vld [vmem:[%s2662_s10 + $0x138] sm:$0xff] }
  0xa2   : > { %1561 = vmatprep.subr.bf16.mxu0 %v2153_v25  ;;  %1602 = vmatprep.subr.bf16.mxu1 %v2155_v26  ;;  %v588_v24 = vld [vmem:[%s2662_s10 + $0x178] sm:$0xff]  ;;  %v2140_v25 = vcombine.low %v563_v13, %v571_v14  ;;  %v2142_v26 = vcombine.low %v564_v15, %v572_v16  ;;  %v1313_v16 = vlaneseq }
  0xa3   : > { %v2159_v28 = vcombine.high %v580_v23, %v588_v24 }
  0xa5   : > { %1562 = vmatpush1.bf16.msra.mxu0 %v2152_v31  ;;  %1603 = vmatpush1.bf16.msra.mxu1 %v2154_v32  ;;  %v596_v31 = vld [vmem:[%s2662_s10 + $0x1b8] sm:$0xff] }
  0xa6   : > { %1563 = vmatprep.subr.bf16.mxu0 %v2169_v33  ;;  %1604 = vmatprep.subr.bf16.mxu1 %v2171_v34  ;;  %v604_v32 = vld [vmem:[%s2662_s10 + $0x1f8] sm:$0xff]  ;;  %v2156_v33 = vcombine.low %v579_v21, %v587_v22  ;;  %v2158_v34 = vcombine.low %v580_v23, %v588_v24  ;;  %v669_v21 = vld [vmem:[%s2820_s16] sm:$0xff]  ;;  %v2330_v22 = vmov 1966171168  }
  0xa7   : > { %v2175_v36 = vcombine.high %v596_v31, %v604_v32  ;;  %v1742_v23 = vunpack.c.l.s4 %v2330_v22 }
  0xa9   : > { %1564 = vmatpush1.bf16.msra.mxu0 %v2168_v39  ;;  %1605 = vmatpush1.bf16.msra.mxu1 %v2170_v40  ;;  %v612_v39 = vld [vmem:[%s2662_s10 + $0x238] sm:$0xff] }
  0xaa   : > { %1565 = vmatprep.subr.bf16.mxu0 %v2185_v41  ;;  %1606 = vmatprep.subr.bf16.mxu1 %v2187_v42  ;;  %v620_v40 = vld [vmem:[%s2662_s10 + $0x278] sm:$0xff]  ;;  %v2172_v41 = vcombine.low %v595_v29, %v603_v30  ;;  %v2189_v42 = vcombine.high %v611_v37, %v619_v38  ;;  %v1743_v29 = vunpack.c.0.s8 %v1742_v23 }
  0xab   : > { %v2191_v43 = vcombine.high %v612_v39, %v620_v40 }
  0xad   : > { %1566 = vmatpush1.bf16.msra.mxu0 %v2184_v47  ;;  %1607 = vmatpush1.bf16.msra.mxu1 %v2186_v48  ;;  %v636_v47 = vld [vmem:[%s2662_s10 + $0x2f8] sm:$0xff]  ;;  %v2188_v48 = vcombine.low %v611_v37, %v619_v38 }
  0xae   : > { %1567 = vmatprep.subr.bf16.mxu0 %v2201_v49  ;;  %1608 = vmatprep.subr.bf16.mxu1 %v2203_v50  ;;  %v2190_v49 = vcombine.low %v612_v39, %v620_v40  ;;  %v2205_v50 = vcombine.high %v627_v44, %v635_v45  ;;  %v2207_v51 = vcombine.high %v628_v46, %v636_v47 }
  0xb1   : > { %1568 = vmatpush1.bf16.msra.mxu0 %v2200_v55  ;;  %1609 = vmatpush1.bf16.msra.mxu1 %v2202_v56  ;;  %v652_v55 = vld [vmem:[%s2662_s10 + $0x378] sm:$0xff]  ;;  %v2204_v56 = vcombine.low %v627_v44, %v635_v45 }
  0xb2   : > { %1569 = vmatprep.subr.bf16.mxu0 %v2217_v57  ;;  %1610 = vmatprep.subr.bf16.mxu1 %v2219_v58  ;;  %v2206_v57 = vcombine.low %v628_v46, %v636_v47  ;;  %v2221_v58 = vcombine.high %v643_v52, %v651_v53  ;;  %v2223_v59 = vcombine.high %v644_v54, %v652_v55 }
  0xb5   : > { %1570 = vmatpush1.bf16.msra.mxu0 %v2216_v63  ;;  %1611 = vmatpush1.bf16.msra.mxu1 %v2218_v1  ;;  %v668_v63 = vld [vmem:[%s2662_s10 + $0x3f8] sm:$0xff]  ;;  %v2220_v1 = vcombine.low %v643_v52, %v651_v53 }
  0xb6   : > { %1571 = vmatprep.subr.bf16.mxu0 %v2233_v2  ;;  %1612 = vmatprep.subr.bf16.mxu1 %v2235_v3  ;;  %v2222_v2 = vcombine.low %v644_v54, %v652_v55  ;;  %v2237_v3 = vcombine.high %v659_v60, %v667_v61  ;;  %v2239_v4 = vcombine.high %v660_v62, %v668_v63 }
  0xb7   : > { %v2238_v6 = vcombine.low %v660_v62, %v668_v63 }
  0xb9   : > { %1572 = vmatpush1.bf16.msra.mxu0 %v2232_v8  ;;  %1613 = vmatpush1.bf16.msra.mxu1 %v2234_v9 }
  0xba   : > { %1639 = vmatprep.subr.bf16.mxu0 %v2125_v10  ;;  %1680 = vmatprep.subr.bf16.mxu1 %v2127_v11 }
  0xbc   : > { %1590 = vmatmul.mubr.bf16.vlgmr.msra.gmra.mrb[8].mxu0 %v2707_v12  ;;  %1631 = vmatmul.mubr.bf16.vlgmr.msra.gmra.mrb[8].mxu1 %v2707_v12 }
  0xbd   : > { %1640 = vmatpush1.bf16.msra.mxu0 %v2124_v17  ;;  %1681 = vmatpush1.bf16.msra.mxu1 %v2126_v18  ;;  %v2814_v17 = vshrl.u32 %v1313_v16, 7 }
  0xbe   : > { %1641 = vmatprep.subr.bf16.mxu0 %v2141_v19  ;;  %1682 = vmatprep.subr.bf16.mxu1 %v2143_v20 }
  0xbf   : > { %1671 = vmatprep.mubr.bf16.mxu0 %v2329_v0  ;;  %1712 = vmatprep.mubr.bf16.mxu1 %v2329_v0  ;;  %v2174_v0 = vcombine.low %v596_v31, %v604_v32  ;;  %v1323_v18 = vsub.s32 2, %v2814_v17  ;;  %v1319_v19 = vsub.s32 1, %v2814_v17  ;;  %v1327_v20 = vsub.s32 3, %v2814_v17 }
  0xc0   : > { %v1339_v30 = vsub.s32 6, %v2814_v17  ;;  %v1335_v31 = vsub.s32 5, %v2814_v17  ;;  %v1343_v32 = vsub.s32 7, %v2814_v17 }
  0xc1   : > { %1642 = vmatpush1.bf16.msra.mxu0 %v2140_v25  ;;  %1683 = vmatpush1.bf16.msra.mxu1 %v2142_v26  ;;  %v1324_v25 = vrot.slane %v669_v21, %v1323_v18  ;;  %v1320_v26 = vrot.slane %v669_v21, %v1319_v19 }
  0xc2   : > { %1643 = vmatprep.subr.bf16.mxu0 %v2157_v27  ;;  %1684 = vmatprep.subr.bf16.mxu1 %v2159_v28  ;;  %v1328_v27 = vrot.slane %v669_v21, %v1327_v20  ;;  %v1331_v28 = vsub.s32 4, %v2814_v17  ;;  %v1340_v38 = vrot.slane %v669_v21, %v1339_v30  ;;  %v1336_v39 = vrot.slane %v669_v21, %v1335_v31 }
  0xc4   : > { %v1332_v37 = vrot.slane %v669_v21, %v1331_v28 }
  0xc5   : > { %1644 = vmatpush1.bf16.msra.mxu0 %v2156_v33  ;;  %1685 = vmatpush1.bf16.msra.mxu1 %v2158_v34 }
  0xc6   : > { %1645 = vmatprep.subr.bf16.mxu0 %v2173_v35  ;;  %1686 = vmatprep.subr.bf16.mxu1 %v2175_v36 }
  0xc9   : > { %1646 = vmatpush1.bf16.msra.mxu0 %v2172_v41  ;;  %1687 = vmatpush1.bf16.msra.mxu1 %v2174_v0  ;;  %v2842_v41 = vsub.s32 %v1743_v29, %v2814_v17 }
  0xca   : > { %1647 = vmatprep.subr.bf16.mxu0 %v2189_v42  ;;  %1688 = vmatprep.subr.bf16.mxu1 %v2191_v43  ;;  %v1344_v42 = vrot.slane %v669_v21, %v1343_v32 }
  0xcd   : > { %1648 = vmatpush1.bf16.msra.mxu0 %v2188_v48  ;;  %1689 = vmatpush1.bf16.msra.mxu1 %v2190_v49 }
  0xce   : > { %1649 = vmatprep.subr.bf16.mxu0 %v2205_v50  ;;  %1690 = vmatprep.subr.bf16.mxu1 %v2207_v51 }
  0xd1   : > { %1650 = vmatpush1.bf16.msra.mxu0 %v2204_v56  ;;  %1691 = vmatpush1.bf16.msra.mxu1 %v2206_v57 }
  0xd2   : > { %1651 = vmatprep.subr.bf16.mxu0 %v2221_v58  ;;  %1692 = vmatprep.subr.bf16.mxu1 %v2223_v59 }
  0xd5   : > { %1652 = vmatpush1.bf16.msra.mxu0 %v2220_v1  ;;  %1693 = vmatpush1.bf16.msra.mxu1 %v2222_v2 }
  0xd6   : > { %1653 = vmatprep.subr.bf16.mxu0 %v2237_v3  ;;  %1694 = vmatprep.subr.bf16.mxu1 %v2239_v4 }
  0xd9   : > { %1654 = vmatpush1.bf16.msra.mxu0 %v2236_v5  ;;  %1695 = vmatpush1.bf16.msra.mxu1 %v2238_v6 }
  0xdc   : > { %1672 = vmatmul.mubr.bf16.vlgmr.msra.gmra.mrb[12].mxu0 %v2707_v12  ;;  %1713 = vmatmul.mubr.bf16.vlgmr.msra.gmra.mrb[12].mxu1 %v2707_v12  ;;  %v1315_v12 = vsub.s32 0, %v2814_v17 }
  0xde   : > { %v1316_v24 = vrot.slane %v669_v21, %v1315_v12 }
 0x14f   : > { %v1427_v7 = vpop.f32.mrb[0].mxu0  ;;  %v1468_v8 = vpop.f32.mrb[0].mxu1 }
 0x150   : > { %v1429_v9 = vpop.f32.mrb[1].mxu0  ;;  %v1470_v10 = vpop.f32.mrb[1].mxu1  ;;  %v2831_v33 = vadd.f32 %v1427_v7, %v1316_v24  ;;  %v2833_v34 = vadd.f32 %v1468_v8, %v1324_v25 }
 0x151   : > { %v1431_v11 = vpop.f32.mrb[2].mxu0  ;;  %v1472_v13 = vpop.f32.mrb[2].mxu1  ;;  %v2835_v35 = vadd.f32 %v1429_v9, %v1320_v26  ;;  %v2837_v36 = vadd.f32 %v1470_v10, %v1328_v27 }
 0x152   : > { %v1432_v14 = vpop.f32.mrb[3].mxu0  ;;  %v1473_v15 = vpop.f32.mrb[3].mxu1  ;;  %v670_v11 = vld [vmem:[%s2820_s16 + $0x8] sm:$0xff]  ;;  %v1842_v27 = vsel %vm1839_vm0, %v2833_v34, -inf }
 0x153   : > { %v1737_v40 = vcombine.low %v2831_v33, %v2835_v35  ;;  %v1738_v0 = vcombine.low %v2833_v34, %v2837_v36  ;;  %v1348_v13 = vrot.slane %v670_v11, %v1315_v12  ;;  %v1352_v14 = vrot.slane %v670_v11, %v1319_v19 }
 0x154   : > { %v1356_v15 = vrot.slane %v670_v11, %v1323_v18  ;;  %v1360_v16 = vrot.slane %v670_v11, %v1327_v20  ;;  %v1364_v24 = vrot.slane %v670_v11, %v1331_v28  ;;  %v1372_v25 = vrot.slane %v670_v11, %v1339_v30 }
 0x155   : > { %v1747_v51 = vrot.slane %v1737_v40, %v2842_v41  ;;  %v1754_v52 = vrot.slane %v1738_v0, %v2842_v41  ;;  %v1368_v19 = vrot.slane %v670_v11, %v1335_v31  ;;  %v1376_v18 = vrot.slane %v670_v11, %v1343_v32 }
 0x156   : > { %v1840_v20 = vsel %vm1839_vm0, %v2831_v33, -inf  ;;  %v1841_v29 = vsel %vm1839_vm0, %v2835_v35, -inf }
 0x157   : > { %v1769_v60 = vcombine.low %v1747_v51, %v1754_v52 }
 0x159   : > { %v1777_v63 = vrot.slane %v1769_v60, %v2842_v41 }
 0x16f   : > { %v1509_v43 = vpop.f32.mrb[4].mxu0  ;;  %v1550_v45 = vpop.f32.mrb[4].mxu1 }
 0x170   : > { %v2846_v44 = vadd.f32 %v1509_v43, %v1332_v37  ;;  %v1511_v46 = vpop.f32.mrb[5].mxu0  ;;  %v2848_v47 = vadd.f32 %v1550_v45, %v1340_v38  ;;  %v1552_v49 = vpop.f32.mrb[5].mxu1 }
 0x171   : > { %v2850_v48 = vadd.f32 %v1511_v46, %v1336_v39  ;;  %v1513_v50 = vpop.f32.mrb[6].mxu0  ;;  %v2854_v53 = vadd.f32 %v1552_v49, %v1344_v42  ;;  %v1554_v54 = vpop.f32.mrb[6].mxu1  ;;  %v1843_v42 = vsel %vm1839_vm0, %v2837_v36, -inf }
 0x172   : > { %v1514_v55 = vpop.f32.mrb[7].mxu0  ;;  %v1555_v57 = vpop.f32.mrb[7].mxu1  ;;  %v1844_v26 = vsel %vm1839_vm0, %v2846_v44, -inf  ;;  %v1848_v28 = vsel %vm1839_vm0, %v2848_v47, -inf }
 0x173   : > { %v1739_v56 = vcombine.low %v2846_v44, %v2850_v48  ;;  %v1740_v58 = vcombine.low %v2848_v47, %v2854_v53  ;;  %v1846_v12 = vsel %vm1839_vm0, %v2850_v48, -inf  ;;  %v1850_v30 = vsel %vm1839_vm0, %v2854_v53, -inf }
 0x174   : > { %v1845_v38 = vmax.f32 %v1840_v20, %v1844_v26  ;;  %v1847_v39 = vmax.f32 %v1841_v29, %v1846_v12  ;;  %v1849_v43 = vmax.f32 %v1842_v27, %v1848_v28  ;;  %v1851_v49 = vmax.f32 %v1843_v42, %v1850_v30 }
 0x175   : > { %v1761_v59 = vrot.slane %v1739_v56, %v2842_v41  ;;  %v1768_v61 = vrot.slane %v1740_v58, %v2842_v41 }
 0x177   : > { %v1770_v62 = vcombine.low %v1761_v59, %v1768_v61 }
 0x179   : > { %v1784_v1 = vrot.slane %v1770_v62, %v2842_v41 }
 0x17b   : > { %v1785_v2 = vcombine.low %v1777_v63, %v1784_v1 }
 0x17d   : > { %1837 = vst [vmem:[%s2868_s20] sm:$0xff] %v1785_v2 }
 0x18f   : > { %v1591_v3 = vpop.f32.mrb[8].mxu0  ;;  %v1632_v4 = vpop.f32.mrb[8].mxu1 }
 0x190   : > { %v1593_v5 = vpop.f32.mrb[9].mxu0  ;;  %v1634_v6 = vpop.f32.mrb[9].mxu1  ;;  %v2872_v17 = vadd.f32 %v1591_v3, %v1348_v13  ;;  %v2876_v22 = vadd.f32 %v1632_v4, %v1356_v15 }
 0x191   : > { %v1595_v7 = vpop.f32.mrb[10].mxu0  ;;  %v1636_v8 = vpop.f32.mrb[10].mxu1  ;;  %v2874_v21 = vadd.f32 %v1593_v5, %v1352_v14  ;;  %v2878_v23 = vadd.f32 %v1634_v6, %v1360_v16 }
 0x192   : > { %v1596_v9 = vpop.f32.mrb[11].mxu0  ;;  %v1637_v10 = vpop.f32.mrb[11].mxu1  ;;  %v1852_v37 = vsel %vm1839_vm0, %v2872_v17, -inf  ;;  %v1856_v40 = vsel %vm1839_vm0, %v2876_v22, -inf }
 0x193   : > { %v1786_v31 = vcombine.low %v2872_v17, %v2874_v21  ;;  %v1854_v32 = vsel %vm1839_vm0, %v2874_v21, -inf  ;;  %v1787_v0 = vcombine.low %v2876_v22, %v2878_v23  ;;  %v1858_v45 = vsel %vm1839_vm0, %v2878_v23, -inf }
 0x194   : > { %v1853_v54 = vmax.f32 %v1845_v38, %v1852_v37  ;;  %v1855_v55 = vmax.f32 %v1847_v39, %v1854_v32  ;;  %v1857_v61 = vmax.f32 %v1849_v43, %v1856_v40  ;;  %v1859_v3 = vmax.f32 %v1851_v49, %v1858_v45 }
 0x195   : > { %v1796_v56 = vrot.slane %v1786_v31, %v2842_v41  ;;  %v1803_v62 = vrot.slane %v1787_v0, %v2842_v41 }
 0x1af   : > { %v1673_v46 = vpop.f32.mrb[12].mxu0  ;;  %v1714_v51 = vpop.f32.mrb[12].mxu1 }
 0x1b0   : > { %v2908_v50 = vadd.f32 %v1673_v46, %v1364_v24  ;;  %v1675_v52 = vpop.f32.mrb[13].mxu0  ;;  %v2911_v57 = vadd.f32 %v1714_v51, %v1372_v25  ;;  %v1716_v59 = vpop.f32.mrb[13].mxu1  ;;  %v1818_v24 = vcombine.low %v1796_v56, %v1803_v62 }
 0x1b1   : > { %v2913_v58 = vadd.f32 %v1675_v52, %v1368_v19  ;;  %v1677_v60 = vpop.f32.mrb[14].mxu0  ;;  %v2916_v63 = vadd.f32 %v1716_v59, %v1376_v18  ;;  %v1718_v1 = vpop.f32.mrb[14].mxu1 }
 0x1b2   : > { %v1678_v2 = vpop.f32.mrb[15].mxu0  ;;  %v1860_v4 = vsel %vm1839_vm0, %v2908_v50, -inf  ;;  %v1719_v6 = vpop.f32.mrb[15].mxu1  ;;  %v1864_v9 = vsel %vm1839_vm0, %v2911_v57, -inf  ;;  %v1826_v20 = vrot.slane %v1818_v24, %v2842_v41 }
 0x1b3   : > { %v1788_v5 = vcombine.low %v2908_v50, %v2913_v58  ;;  %v1861_v7 = vmax.f32 %v1853_v54, %v1860_v4  ;;  %v1862_v8 = vsel %vm1839_vm0, %v2913_v58, -inf  ;;  %v1789_v10 = vcombine.low %v2911_v57, %v2916_v63 }
 0x1b4   : > { %v1863_v11 = vmax.f32 %v1855_v55, %v1862_v8  ;;  %v1865_v13 = vmax.f32 %v1857_v61, %v1864_v9  ;;  %v1866_v14 = vsel %vm1839_vm0, %v2916_v63, -inf }
 0x1b5   : > { %v1810_v15 = vrot.slane %v1788_v5, %v2842_v41  ;;  %v1867_v16 = vmax.f32 %v1859_v3, %v1866_v14  ;;  %v1817_v25 = vrot.slane %v1789_v10, %v2842_v41 }
 0x1b6   : > { %v1868_v26 = vmax.f32 %v1861_v7, %v1863_v11 }
 0x1b7   : > { %v1869_v12 = vmax.f32 %v1865_v13, %v1867_v16  ;;  %v1819_v19 = vcombine.low %v1810_v15, %v1817_v25 }
 0x1b9   : > { %v1870_v18 = vmax.f32 %v1868_v26, %v1869_v12  ;;  %v1833_v27 = vrot.slane %v1819_v19, %v2842_v41 }
 0x1bb   : > { %1871 = vmax.xlane.f32.xlu0 %v1870_v18  ;;  %v1834_v29 = vcombine.low %v1826_v20, %v1833_v27 }
 0x1bd   : > { %1838 = vst [vmem:[%s2868_s20 + $0x8] sm:$0xff] %v1834_v29 }
 0x248   : > { %v1872_v28 = vpop.xlane.xlu0 %1871 }
 0x249   : > { %v1873_v30 = vrot.slane %v1872_v28, 4 }
 0x24b   : > { %v1874_v37 = vmax.f32 %v1872_v28, %v1873_v30 }
 0x24d   : > { %v1875_v31 = vrot.slane %v1874_v37, 2 }
 0x24f   : > { %v1876_v32 = vmax.f32 %v1874_v37, %v1875_v31 }
 0x251   : > { %v1877_v38 = vrot.slane %v1876_v32, 1 }
 0x253   : > { %v1878_v39 = vmax.f32 %v1876_v32, %v1877_v38 }
 0x255   : > { %2243 = vpush %v1878_v39 }
 0x286   : > { %s2244_s28 = spop %2243 }
 0x287   : > { %v2945_v41 = vstv %s2244_s28 }
 0x288   : > { %v1881_v40 = vsub.f32 %v2831_v33, %v2945_v41  ;;  %v1882_v0 = vsub.f32 %v2835_v35, %v2945_v41  ;;  %v1883_v42 = vsub.f32 %v2833_v34, %v2945_v41  ;;  %1969 = vst [vmem:[%s534_s27] sm:$0xff] %v2945_v41  ;;  %v1884_v43 = vsub.f32 %v2837_v36, %v2945_v41 }
 0x289   : > { %v1885_v45 = vsub.f32 %v2846_v44, %v2945_v41  ;;  %v1886_v33 = vsub.f32 %v2850_v48, %v2945_v41  ;;  %v1887_v35 = vsub.f32 %v2848_v47, %v2945_v41  ;;  %v1888_v36 = vsub.f32 %v2854_v53, %v2945_v41 }
 0x28a   : > { %v1897_v46 = vmul.f32 1.442695, %v1881_v40  ;;  %v1899_v49 = vmul.f32 1.442695, %v1882_v0  ;;  %v1901_v51 = vmul.f32 1.442695, %v1883_v42  ;;  %v1889_v44 = vsub.f32 %v2872_v17, %v2945_v41 }
 0x28b   : > { %v1903_v52 = vmul.f32 1.442695, %v1884_v43  ;;  %v1905_v34 = vmul.f32 1.442695, %v1885_v45  ;;  %v1907_v54 = vmul.f32 1.442695, %v1886_v33  ;;  %v1890_v48 = vsub.f32 %v2874_v21, %v2945_v41 }
 0x28c   : > { %2273 = vpow2.f32 %v1897_v46  ;;  %v1909_v55 = vmul.f32 1.442695, %v1887_v35  ;;  %v1911_v56 = vmul.f32 1.442695, %v1888_v36  ;;  %v1891_v47 = vsub.f32 %v2876_v22, %v2945_v41 }
 0x28d   : > { %2275 = vpow2.f32 %v1899_v49  ;;  %v1913_v59 = vmul.f32 1.442695, %v1889_v44  ;;  %v1892_v53 = vsub.f32 %v2878_v23, %v2945_v41  ;;  %v1915_v62 = vmul.f32 1.442695, %v1890_v48 }
 0x28e   : > { %2277 = vpow2.f32 %v1901_v51  ;;  %v1893_v3 = vsub.f32 %v2908_v50, %v2945_v41  ;;  %v1917_v22 = vmul.f32 1.442695, %v1891_v47  ;;  %v1894_v23 = vsub.f32 %v2913_v58, %v2945_v41 }
 0x28f   : > { %2279 = vpow2.f32 %v1903_v52  ;;  %v1919_v7 = vmul.f32 1.442695, %v1892_v53  ;;  %v1895_v11 = vsub.f32 %v2911_v57, %v2945_v41  ;;  %v1896_v16 = vsub.f32 %v2916_v63, %v2945_v41 }
 0x290   : > { %2281 = vpow2.f32 %v1905_v34  ;;  %v1921_v50 = vmul.f32 1.442695, %v1893_v3  ;;  %v1923_v58 = vmul.f32 1.442695, %v1894_v23 }
 0x291   : > { %2283 = vpow2.f32 %v1907_v54  ;;  %v1925_v12 = vmul.f32 1.442695, %v1895_v11  ;;  %v1927_v20 = vmul.f32 1.442695, %v1896_v16 }
 0x292   : > { %2285 = vpow2.f32 %v1909_v55 }
 0x293   : > { %2287 = vpow2.f32 %v1911_v56 }
 0x294   : > { %2289 = vpow2.f32 %v1913_v59 }
 0x295   : > { %2291 = vpow2.f32 %v1915_v62 }
 0x296   : > { %v2274_v60 = vpop.eup %2273  ;;  %2293 = vpow2.f32 %v1917_v22 }
 0x297   : > { %v2276_v61 = vpop.eup %2275  ;;  %v1929_v17 = vsel %vm1839_vm0, %v2274_v60, 0.0  ;;  %2295 = vpow2.f32 %v1919_v7 }
 0x298   : > { %v2278_v1 = vpop.eup %2277  ;;  %v1930_v2 = vsel %vm1839_vm0, %v2276_v61, 0.0  ;;  %2297 = vpow2.f32 %v1921_v50 }
 0x299   : > { %v2280_v21 = vpop.eup %2279  ;;  %v1931_v4 = vadd.f32 %v1930_v2, %v1929_v17  ;;  %v1932_v5 = vsel %vm1839_vm0, %v2278_v1, 0.0  ;;  %2299 = vpow2.f32 %v1923_v58 }
 0x29a   : > { %v2282_v6 = vpop.eup %2281  ;;  %v1934_v9 = vsel %vm1839_vm0, %v2280_v21, 0.0  ;;  %2301 = vpow2.f32 %v1925_v12 }
 0x29b   : > { %v1933_v8 = vadd.f32 %v1932_v5, %v1931_v4  ;;  %v2284_v10 = vpop.eup %2283  ;;  %v1936_v14 = vsel %vm1839_vm0, %v2282_v6, 0.0  ;;  %2303 = vpow2.f32 %v1927_v20 }
 0x29c   : > { %v2286_v15 = vpop.eup %2285  ;;  %v1938_v25 = vsel %vm1839_vm0, %v2284_v10, 0.0 }
 0x29d   : > { %v1935_v13 = vadd.f32 %v1934_v9, %v1933_v8  ;;  %v2288_v26 = vpop.eup %2287  ;;  %v1940_v57 = vsel %vm1839_vm0, %v2286_v15, 0.0 }
 0x29e   : > { %v2290_v18 = vpop.eup %2289  ;;  %v1942_v29 = vsel %vm1839_vm0, %v2288_v26, 0.0 }
 0x29f   : > { %v1937_v24 = vadd.f32 %v1936_v14, %v1935_v13  ;;  %v2292_v28 = vpop.eup %2291  ;;  %v1944_v30 = vsel %vm1839_vm0, %v2290_v18, 0.0 }
 0x2a0   : > { %v2294_v37 = vpop.eup %2293  ;;  %v1946_v32 = vsel %vm1839_vm0, %v2292_v28, 0.0 }
 0x2a1   : > { %v1939_v19 = vadd.f32 %v1938_v25, %v1937_v24  ;;  %v2296_v38 = vpop.eup %2295  ;;  %v1948_v41 = vsel %vm1839_vm0, %v2294_v37, 0.0 }
 0x2a2   : > { %v2298_v40 = vpop.eup %2297  ;;  %v1950_v42 = vsel %vm1839_vm0, %v2296_v38, 0.0 }
 0x2a3   : > { %v1941_v27 = vadd.f32 %v1940_v57, %v1939_v19  ;;  %v2300_v43 = vpop.eup %2299  ;;  %v1952_v46 = vsel %vm1839_vm0, %v2298_v40, 0.0 }
 0x2a4   : > { %v2302_v49 = vpop.eup %2301  ;;  %v1954_v33 = vsel %vm1839_vm0, %v2300_v43, 0.0 }
 0x2a5   : > { %v1943_v63 = vadd.f32 %v1942_v29, %v1941_v27  ;;  %v2304_v52 = vpop.eup %2303  ;;  %v1956_v34 = vsel %vm1839_vm0, %v2302_v49, 0.0 }
 0x2a6   : > { %v1958_v54 = vsel %vm1839_vm0, %v2304_v52, 0.0 }
 0x2a7   : > { %v1945_v31 = vadd.f32 %v1944_v30, %v1943_v63 }
 0x2a9   : > { %v1947_v39 = vadd.f32 %v1946_v32, %v1945_v31 }
 0x2ab   : > { %v1949_v0 = vadd.f32 %v1948_v41, %v1947_v39 }
 0x2ad   : > { %v1951_v45 = vadd.f32 %v1950_v42, %v1949_v0 }
 0x2af   : > { %v1953_v51 = vadd.f32 %v1952_v46, %v1951_v45 }
 0x2b1   : > { %v1955_v35 = vadd.f32 %v1954_v33, %v1953_v51 }
 0x2b3   : > { %v1957_v36 = vadd.f32 %v1956_v34, %v1955_v35 }
 0x2b5   : > { %v1959_v44 = vadd.f32 %v1958_v54, %v1957_v36 }
 0x2b7   : > { %1960 = vadd.xlane.f32.xlu0 %v1959_v44 }
 0x344   : > { %v1961_v55 = vpop.xlane.xlu0 %1960 }
 0x345   : > { %v1962_v48 = vrot.slane %v1961_v55, 4 }
 0x347   : > { %v1963_v56 = vadd.f32 %v1962_v48, %v1961_v55 }
 0x349   : > { %v1964_v47 = vrot.slane %v1963_v56, 2 }
 0x34b   : > { %v1965_v59 = vadd.f32 %v1964_v47, %v1963_v56 }
 0x34d   : > { %v1966_v60 = vrot.slane %v1965_v59, 1 }
 0x34f   : > { %v1967_v61 = vadd.f32 %v1966_v60, %v1965_v59 }
 0x351   : > { %2245 = vpush %v1967_v61 }
 0x382   : > { %s2246_s7 = spop %2245 }
 0x383   : > { %v1970_v53 = vstv %s2246_s7 }
 0x384   : > { %1971 = vst [vmem:[%s538_s6] sm:$0xff] %v1970_v53 }
 0x385 PF: > { %p13_p10 = scmp.ge.s32.totalorder %s2380_s22, 5   ;;  %s3017_s18 = smov %s2323_s19 }
 0x386   : > { %s3018_s19 = smov %s2389_s25  ;;  %s3019_s20 = smov %s2380_s22 }
 0x387   :  { %15 = sbr.rel (!%p13_p10) target bundleno = 2 (0x2), region = 117 }

</bundles_post_ra>
